<compile_context>
chip_gen: v7x
topology: tpu7x:2x2x1
jax: 0.10.0
libtpu: 0.0.40
codegen_flags: <defaults>
</compile_context>

<pallas_src>
import jax
import jax.numpy as jnp
import numpy as np
from jax.experimental import pallas as pl
from jax.experimental.pallas import tpu as pltpu

EPS = 1e-5


# --------------------------------------------------------------------------------------
# Fused kernel: all conv+BN+ReLU layers + adaptive-pool + linear, one image per grid step
# --------------------------------------------------------------------------------------
def make_fused_kernel(num_layers, H, W, return_intermediates):
    HW = H * W

    def kernel(*refs):
        pos = 0
        x_ref = refs[pos]; pos += 1                      # (1, Cin0, HW)
        masks_ref = refs[pos]; pos += 1                  # (9, HW) tap validity masks
        layer_refs = []
        for _ in range(num_layers):                      # (Cout,9Cin), (Cout,1), (Cout,1)
            layer_refs.append(refs[pos:pos + 3]); pos += 3
        pbig_ref, dmask_ref, wlin_ref, blin_ref = refs[pos:pos + 4]; pos += 4
        o_ref = refs[pos]; pos += 1                      # (1, 1, NCp)
        if return_intermediates:
            inter_refs = refs[pos:pos + num_layers]; pos += num_layers
        else:
            inter_refs = ()
        col_refs = refs[pos:pos + num_layers]            # im2col VMEM scratch per layer

        masks = masks_ref[...]                           # (9, HW)
        act = x_ref[0]                                   # (Cin0, HW), lane-dense

        for layer in range(num_layers):
            w_ref, s_ref, b_ref = layer_refs[layer]
            col_ref = col_refs[layer]
            cin = act.shape[0]
            # Build the im2col matrix (9*Cin, HW) with lane rolls + border masks.
            for k in range(9):
                dy, dx = k // 3 - 1, k % 3 - 1
                off = dy * W + dx
                if off == 0:
                    tap = act                            # centre tap: mask is all ones
                else:
                    rolled = pltpu.roll(act, shift=(-off) % HW, axis=1)
                    tap = rolled * masks[k:k + 1, :]
                col_ref[k * cin:(k + 1) * cin, :] = tap
            # One MXU matmul for the whole 3x3 conv (K = 9*Cin), then fused BN + ReLU.
            conv = jnp.dot(w_ref[...], col_ref[...],
                           preferred_element_type=jnp.float32)      # (Cout, HW)
            act = jnp.maximum(conv * s_ref[...] + b_ref[...], 0.0)
            if return_intermediates:
                inter_refs[layer][0] = act

        # Classifier head: pool-as-matmul, block-diagonal mask, linear, row-reduce.
        z = jnp.dot(act, pbig_ref[...], preferred_element_type=jnp.float32)  # (Cf, Cf*49)
        z = z * dmask_ref[...]
        y = jnp.dot(z, wlin_ref[...], preferred_element_type=jnp.float32)    # (Cf, NCp)
        o_ref[0] = jnp.sum(y, axis=0, keepdims=True) + blin_ref[...]         # (1, NCp)

    return kernel


def simple_interpretable_classifier_forward(x_nchw, params, return_intermediates=False):
    N, C0, H, W = x_nchw.shape
    HW = H * W
    layers = params["layers"]
    num_layers = len(layers)
    NCp = params["blin"].shape[1]
    nc = params["num_classes"]

    x2 = x_nchw.reshape(N, C0, HW)          # NCHW -> (N, C, H*W): free reshape

    in_specs = [
        pl.BlockSpec((1, C0, HW), lambda n: (n, 0, 0)),
        pl.BlockSpec((9, HW), lambda n: (0, 0)),
    ]
    inputs = [x2, params["masks"]]
    for lp in layers:
        co, k9 = lp["wk"].shape
        in_specs += [
            pl.BlockSpec((co, k9), lambda n: (0, 0)),
            pl.BlockSpec((co, 1), lambda n: (0, 0)),
            pl.BlockSpec((co, 1), lambda n: (0, 0)),
        ]
        inputs += [lp["wk"], lp["scale"], lp["bias"]]
    in_specs += [
        pl.BlockSpec(params["pbig"].shape, lambda n: (0, 0)),
        pl.BlockSpec(params["dmask"].shape, lambda n: (0, 0)),
        pl.BlockSpec(params["wlin2"].shape, lambda n: (0, 0)),
        pl.BlockSpec((1, NCp), lambda n: (0, 0)),
    ]
    inputs += [params["pbig"], params["dmask"], params["wlin2"], params["blin"]]

    out_shapes = [jax.ShapeDtypeStruct((N, 1, NCp), jnp.float32)]
    out_specs = [pl.BlockSpec((1, 1, NCp), lambda n: (n, 0, 0))]
    if return_intermediates:
        for lp in layers:
            co = lp["wk"].shape[0]
            out_shapes.append(jax.ShapeDtypeStruct((N, co, HW), jnp.float32))
            out_specs.append(pl.BlockSpec((1, co, HW), lambda n: (n, 0, 0)))

    scratch_shapes = [pltpu.VMEM((lp["wk"].shape[1], HW), jnp.float32) for lp in layers]

    kernel = make_fused_kernel(num_layers, H, W, return_intermediates)
    outs = pl.pallas_call(
        kernel,
        out_shape=tuple(out_shapes),
        grid=(N,),
        in_specs=in_specs,
        out_specs=tuple(out_specs),
        scratch_shapes=scratch_shapes,
        compiler_params=pltpu.CompilerParams(dimension_semantics=("parallel",)),
    )(*inputs)

    logits = outs[0].reshape(N, NCp)[:, :nc]
    if return_intermediates:
        inters = [o.reshape(N, o.shape[1], H, W) for o in outs[1:]]  # already NCHW order
        return logits, inters
    return logits


# --------------------------------------------------------------------------------------
# Parameter construction (shapes follow the PyTorch module __init__) + kernel constants
# --------------------------------------------------------------------------------------
def adaptive_bins(in_size, out_size):
    # Same bin boundaries as torch.nn.AdaptiveAvgPool2d.
    bins = []
    for i in range(out_size):
        start = (i * in_size) // out_size
        end = -((-(i + 1) * in_size) // out_size)
        bins.append((start, end))
    return tuple(bins)


def init_params(key, layer_configs, num_classes, H, W):
    assert H >= 7 and W >= 7, "AdaptiveAvgPool2d((7,7)) requires H, W >= 7"
    HW = H * W
    NCp = ((num_classes + 127) // 128) * 128
    params = {"layers": [], "num_classes": num_classes}

    for (cin, cout) in layer_configs:
        key, k1, k2, k3, k4, k5, k6 = jax.random.split(key, 7)
        w = 0.1 * jax.random.normal(k1, (cout, cin, 3, 3), jnp.float32)   # OIHW
        b = 0.1 * jax.random.normal(k2, (cout,), jnp.float32)
        gamma = 1.0 + 0.1 * jax.random.normal(k3, (cout,), jnp.float32)
        beta = 0.1 * jax.random.normal(k4, (cout,), jnp.float32)
        rmean = 0.1 * jax.random.normal(k5, (cout,), jnp.float32)
        rvar = 0.5 + jnp.abs(jax.random.normal(k6, (cout,), jnp.float32))
        scale = gamma / jnp.sqrt(rvar + EPS)
        bias = (b - rmean) * scale + beta
        # (Cout, 9*Cin) with column index = (ky*3 + kx)*Cin + ci  (matches the kernel).
        wk = jnp.transpose(w, (0, 2, 3, 1)).reshape(cout, 9 * cin)
        params["layers"].append({
            "wk": wk,
            "scale": scale.reshape(cout, 1),
            "bias": bias.reshape(cout, 1),
            "torch": (w, b, gamma, beta, rmean, rvar),
        })

    cf = layer_configs[-1][1]
    key, k1, k2 = jax.random.split(key, 3)
    W_lin = 0.05 * jax.random.normal(k1, (num_classes, cf * 49), jnp.float32)
    b_lin = 0.05 * jax.random.normal(k2, (num_classes,), jnp.float32)
    params["W_lin"], params["b_lin"] = W_lin, b_lin

    # Tap validity masks (implements the conv's zero padding) -- (9, H*W).
    m = np.zeros((9, HW), np.float32)
    for k in range(9):
        dy, dx = k // 3 - 1, k % 3 - 1
        for h in range(H):
            for w_ in range(W):
                if 0 <= h + dy < H and 0 <= w_ + dx < W:
                    m[k, h * W + w_] = 1.0
    params["masks"] = jnp.asarray(m)

    # Adaptive-avg-pool as a matrix (H*W, 49), tiled along columns once per channel.
    P = np.zeros((HW, 49), np.float32)
    hb, wb = adaptive_bins(H, 7), adaptive_bins(W, 7)
    for i, (hs, he) in enumerate(hb):
        for j, (ws, we) in enumerate(wb):
            area = float((he - hs) * (we - ws))
            for h in range(hs, he):
                for w_ in range(ws, we):
                    P[h * W + w_, i * 7 + j] = 1.0 / area
    params["pbig"] = jnp.asarray(np.tile(P, (1, cf)))                 # (HW, cf*49)

    dm = np.zeros((cf, cf * 49), np.float32)                          # block-diagonal mask
    for c in range(cf):
        dm[c, c * 49:(c + 1) * 49] = 1.0
    params["dmask"] = jnp.asarray(dm)

    # Linear weight in PyTorch flatten order (c*49 + bin), classes padded to 128 lanes.
    wlin2 = np.zeros((cf * 49, NCp), np.float32)
    wlin2[:, :num_classes] = np.asarray(W_lin).T
    params["wlin2"] = jnp.asarray(wlin2)
    blin = np.zeros((1, NCp), np.float32)
    blin[0, :num_classes] = np.asarray(b_lin)
    params["blin"] = jnp.asarray(blin)
    return params


# --------------------------------------------------------------------------------------
# Pure-JAX reference (matches PyTorch eval-mode forward) for a sanity check
# --------------------------------------------------------------------------------------
def reference_forward(x_nchw, params, return_intermediates=False):
    cur = x_nchw
    inters = []
    for lp in params["layers"]:
        w, b, gamma, beta, rmean, rvar = lp["torch"]
        y = jax.lax.conv_general_dilated(
            cur, w, window_strides=(1, 1), padding=((1, 1), (1, 1)),
            dimension_numbers=("NCHW", "OIHW", "NCHW"))
        y = y + b[None, :, None, None]
        y = (y - rmean[None, :, None, None]) / jnp.sqrt(rvar[None, :, None, None] + EPS)
        y = y * gamma[None, :, None, None] + beta[None, :, None, None]
        cur = jnp.maximum(y, 0.0)
        inters.append(cur)
    N, C, H, W = cur.shape
    hb, wb = adaptive_bins(H, 7), adaptive_bins(W, 7)
    pooled = jnp.stack(
        [jnp.stack([cur[:, :, hs:he, ws:we].mean(axis=(2, 3)) for ws, we in wb], axis=-1)
         for hs, he in hb],
        axis=-2)  # (N, C, 7, 7)
    feat = pooled.reshape(N, -1)
    logits = feat @ params["W_lin"].T + params["b_lin"][None, :]
    if return_intermediates:
        return logits, inters
    return logits


if __name__ == "__main__":
    layer_configs = [(4, 8), (8, 16)]
    num_classes = 10
    H = W = 16

    key = jax.random.PRNGKey(0)
    kx, kp = jax.random.split(key)
    x = jax.random.normal(kx, (2, 4, H, W), jnp.float32)  # NCHW, like PyTorch
    params = init_params(kp, layer_configs, num_classes, H, W)

    logits = simple_interpretable_classifier_forward(x, params)
    logits = jax.block_until_ready(logits)

    ref_logits, ref_inters = reference_forward(x, params, return_intermediates=True)
    np.testing.assert_allclose(np.asarray(logits), np.asarray(ref_logits),
                               rtol=1e-3, atol=1e-3)

    # Exercise the return_intermediates variant as well.
    logits2, inters = simple_interpretable_classifier_forward(
        x, params, return_intermediates=True)
    jax.block_until_ready(logits2)
    np.testing.assert_allclose(np.asarray(logits2), np.asarray(ref_logits),
                               rtol=1e-3, atol=1e-3)
    for got, want in zip(inters, ref_inters):
        np.testing.assert_allclose(np.asarray(got), np.asarray(want),
                                   rtol=1e-3, atol=1e-3)

    print("KERNEL_OK")
</pallas_src>

<mosaic_0001>
module attributes {stable_mosaic.version = 11 : i64} {
  func.func @kernel(%arg0: i32, %arg1: memref<1x4x256xf32, #tpu.memory_space<vmem>>, %arg2: memref<9x256xf32, #tpu.memory_space<vmem>>, %arg3: memref<8x36xf32, #tpu.memory_space<vmem>>, %arg4: memref<8x1xf32, #tpu.memory_space<vmem>>, %arg5: memref<8x1xf32, #tpu.memory_space<vmem>>, %arg6: memref<16x72xf32, #tpu.memory_space<vmem>>, %arg7: memref<16x1xf32, #tpu.memory_space<vmem>>, %arg8: memref<16x1xf32, #tpu.memory_space<vmem>>, %arg9: memref<256x784xf32, #tpu.memory_space<vmem>>, %arg10: memref<16x784xf32, #tpu.memory_space<vmem>>, %arg11: memref<784x128xf32, #tpu.memory_space<vmem>>, %arg12: memref<1x128xf32, #tpu.memory_space<vmem>>, %arg13: memref<1x1x128xf32, #tpu.memory_space<vmem>>, %arg14: memref<36x256xf32, #tpu.memory_space<vmem>>, %arg15: memref<72x256xf32, #tpu.memory_space<vmem>>) attributes {dimension_semantics = [#tpu.dimension_semantics<parallel>], iteration_bounds = array<i64: 2>, scalar_prefetch = 0 : i64, scratch_operands = 2 : i64, tpu.core_type = #tpu.core_type<tc>, window_params = [{transform_indices = @transform_0, window_bounds = array<i64: 1, 4, 256>}, {pipeline_mode = #tpu.pipeline_mode<synchronous>, transform_indices = @transform_1, window_bounds = array<i64: 9, 256>}, {pipeline_mode = #tpu.pipeline_mode<synchronous>, transform_indices = @transform_2, window_bounds = array<i64: 8, 36>}, {pipeline_mode = #tpu.pipeline_mode<synchronous>, transform_indices = @transform_3, window_bounds = array<i64: 8, 1>}, {pipeline_mode = #tpu.pipeline_mode<synchronous>, transform_indices = @transform_4, window_bounds = array<i64: 8, 1>}, {pipeline_mode = #tpu.pipeline_mode<synchronous>, transform_indices = @transform_5, window_bounds = array<i64: 16, 72>}, {pipeline_mode = #tpu.pipeline_mode<synchronous>, transform_indices = @transform_6, window_bounds = array<i64: 16, 1>}, {pipeline_mode = #tpu.pipeline_mode<synchronous>, transform_indices = @transform_7, window_bounds = array<i64: 16, 1>}, {pipeline_mode = #tpu.pipeline_mode<synchronous>, transform_indices = @transform_8, window_bounds = array<i64: 256, 784>}, {pipeline_mode = #tpu.pipeline_mode<synchronous>, transform_indices = @transform_9, window_bounds = array<i64: 16, 784>}, {pipeline_mode = #tpu.pipeline_mode<synchronous>, transform_indices = @transform_10, window_bounds = array<i64: 784, 128>}, {pipeline_mode = #tpu.pipeline_mode<synchronous>, transform_indices = @transform_11, window_bounds = array<i64: 1, 128>}, {transform_indices = @transform_12, window_bounds = array<i64: 1, 1, 128>}]} {
    %c0 = arith.constant 0 : index
    %c0_0 = arith.constant 0 : index
    %0 = vector.load %arg2[%c0, %c0_0] : memref<9x256xf32, #tpu.memory_space<vmem>>, vector<9x256xf32>
    %c0_1 = arith.constant 0 : index
    %c0_2 = arith.constant 0 : index
    %c0_3 = arith.constant 0 : index
    %1 = vector.load %arg1[%c0_1, %c0_2, %c0_3] : memref<1x4x256xf32, #tpu.memory_space<vmem>>, vector<1x4x256xf32>
    %2 = vector.shape_cast %1 : vector<1x4x256xf32> to vector<4x256xf32>
    %c17_i32 = arith.constant 17 : i32
    %3 = tpu.dynamic_rotate %2 by %c17_i32 dim 1 : vector<4x256xf32>, i32 -> vector<4x256xf32>
    %4 = vector.extract_strided_slice %0 {offsets = [0, 0], sizes = [1, 256], strides = [1, 1]} : vector<9x256xf32> to vector<1x256xf32>
    %5 = vector.broadcast %4 : vector<1x256xf32> to vector<4x256xf32>
    %6 = arith.mulf %3, %5 : vector<4x256xf32>
    %c0_4 = arith.constant 0 : index
    %c0_5 = arith.constant 0 : index
    %7 = vector.load %arg14[%c0_4, %c0_5] : memref<36x256xf32, #tpu.memory_space<vmem>>, vector<4x256xf32>
    tpu.vector_store %arg14[%c0_4, %c0_5], %6 {strides = array<i32>} : memref<36x256xf32, #tpu.memory_space<vmem>>, vector<4x256xf32>,
    %c16_i32 = arith.constant 16 : i32
    %8 = tpu.dynamic_rotate %2 by %c16_i32 dim 1 : vector<4x256xf32>, i32 -> vector<4x256xf32>
    %9 = vector.extract_strided_slice %0 {offsets = [1, 0], sizes = [1, 256], strides = [1, 1]} : vector<9x256xf32> to vector<1x256xf32>
    %10 = vector.broadcast %9 : vector<1x256xf32> to vector<4x256xf32>
    %11 = arith.mulf %8, %10 : vector<4x256xf32>
    %c4 = arith.constant 4 : index
    %c0_6 = arith.constant 0 : index
    %12 = vector.load %arg14[%c4, %c0_6] : memref<36x256xf32, #tpu.memory_space<vmem>>, vector<4x256xf32>
    tpu.vector_store %arg14[%c4, %c0_6], %11 {strides = array<i32>} : memref<36x256xf32, #tpu.memory_space<vmem>>, vector<4x256xf32>,
    %c15_i32 = arith.constant 15 : i32
    %13 = tpu.dynamic_rotate %2 by %c15_i32 dim 1 : vector<4x256xf32>, i32 -> vector<4x256xf32>
    %14 = vector.extract_strided_slice %0 {offsets = [2, 0], sizes = [1, 256], strides = [1, 1]} : vector<9x256xf32> to vector<1x256xf32>
    %15 = vector.broadcast %14 : vector<1x256xf32> to vector<4x256xf32>
    %16 = arith.mulf %13, %15 : vector<4x256xf32>
    %c8 = arith.constant 8 : index
    %c0_7 = arith.constant 0 : index
    %17 = vector.load %arg14[%c8, %c0_7] : memref<36x256xf32, #tpu.memory_space<vmem>>, vector<4x256xf32>
    tpu.vector_store %arg14[%c8, %c0_7], %16 {strides = array<i32>} : memref<36x256xf32, #tpu.memory_space<vmem>>, vector<4x256xf32>,
    %c1_i32 = arith.constant 1 : i32
    %18 = tpu.dynamic_rotate %2 by %c1_i32 dim 1 : vector<4x256xf32>, i32 -> vector<4x256xf32>
    %19 = vector.extract_strided_slice %0 {offsets = [3, 0], sizes = [1, 256], strides = [1, 1]} : vector<9x256xf32> to vector<1x256xf32>
    %20 = vector.broadcast %19 : vector<1x256xf32> to vector<4x256xf32>
    %21 = arith.mulf %18, %20 : vector<4x256xf32>
    %c12 = arith.constant 12 : index
    %c0_8 = arith.constant 0 : index
    %22 = vector.load %arg14[%c12, %c0_8] : memref<36x256xf32, #tpu.memory_space<vmem>>, vector<4x256xf32>
    tpu.vector_store %arg14[%c12, %c0_8], %21 {strides = array<i32>} : memref<36x256xf32, #tpu.memory_space<vmem>>, vector<4x256xf32>,
    %c16 = arith.constant 16 : index
    %c0_9 = arith.constant 0 : index
    %23 = vector.load %arg14[%c16, %c0_9] : memref<36x256xf32, #tpu.memory_space<vmem>>, vector<4x256xf32>
    tpu.vector_store %arg14[%c16, %c0_9], %2 {strides = array<i32>} : memref<36x256xf32, #tpu.memory_space<vmem>>, vector<4x256xf32>,
    %c255_i32 = arith.constant 255 : i32
    %24 = tpu.dynamic_rotate %2 by %c255_i32 dim 1 : vector<4x256xf32>, i32 -> vector<4x256xf32>
    %25 = vector.extract_strided_slice %0 {offsets = [5, 0], sizes = [1, 256], strides = [1, 1]} : vector<9x256xf32> to vector<1x256xf32>
    %26 = vector.broadcast %25 : vector<1x256xf32> to vector<4x256xf32>
    %27 = arith.mulf %24, %26 : vector<4x256xf32>
    %c20 = arith.constant 20 : index
    %c0_10 = arith.constant 0 : index
    %28 = vector.load %arg14[%c20, %c0_10] : memref<36x256xf32, #tpu.memory_space<vmem>>, vector<4x256xf32>
    tpu.vector_store %arg14[%c20, %c0_10], %27 {strides = array<i32>} : memref<36x256xf32, #tpu.memory_space<vmem>>, vector<4x256xf32>,
    %c241_i32 = arith.constant 241 : i32
    %29 = tpu.dynamic_rotate %2 by %c241_i32 dim 1 : vector<4x256xf32>, i32 -> vector<4x256xf32>
    %30 = vector.extract_strided_slice %0 {offsets = [6, 0], sizes = [1, 256], strides = [1, 1]} : vector<9x256xf32> to vector<1x256xf32>
    %31 = vector.broadcast %30 : vector<1x256xf32> to vector<4x256xf32>
    %32 = arith.mulf %29, %31 : vector<4x256xf32>
    %c24 = arith.constant 24 : index
    %c0_11 = arith.constant 0 : index
    %33 = vector.load %arg14[%c24, %c0_11] : memref<36x256xf32, #tpu.memory_space<vmem>>, vector<4x256xf32>
    tpu.vector_store %arg14[%c24, %c0_11], %32 {strides = array<i32>} : memref<36x256xf32, #tpu.memory_space<vmem>>, vector<4x256xf32>,
    %c240_i32 = arith.constant 240 : i32
    %34 = tpu.dynamic_rotate %2 by %c240_i32 dim 1 : vector<4x256xf32>, i32 -> vector<4x256xf32>
    %35 = vector.extract_strided_slice %0 {offsets = [7, 0], sizes = [1, 256], strides = [1, 1]} : vector<9x256xf32> to vector<1x256xf32>
    %36 = vector.broadcast %35 : vector<1x256xf32> to vector<4x256xf32>
    %37 = arith.mulf %34, %36 : vector<4x256xf32>
    %c28 = arith.constant 28 : index
    %c0_12 = arith.constant 0 : index
    %38 = vector.load %arg14[%c28, %c0_12] : memref<36x256xf32, #tpu.memory_space<vmem>>, vector<4x256xf32>
    tpu.vector_store %arg14[%c28, %c0_12], %37 {strides = array<i32>} : memref<36x256xf32, #tpu.memory_space<vmem>>, vector<4x256xf32>,
    %c239_i32 = arith.constant 239 : i32
    %39 = tpu.dynamic_rotate %2 by %c239_i32 dim 1 : vector<4x256xf32>, i32 -> vector<4x256xf32>
    %40 = vector.extract_strided_slice %0 {offsets = [8, 0], sizes = [1, 256], strides = [1, 1]} : vector<9x256xf32> to vector<1x256xf32>
    %41 = vector.broadcast %40 : vector<1x256xf32> to vector<4x256xf32>
    %42 = arith.mulf %39, %41 : vector<4x256xf32>
    %c32 = arith.constant 32 : index
    %c0_13 = arith.constant 0 : index
    %43 = vector.load %arg14[%c32, %c0_13] : memref<36x256xf32, #tpu.memory_space<vmem>>, vector<4x256xf32>
    tpu.vector_store %arg14[%c32, %c0_13], %42 {strides = array<i32>} : memref<36x256xf32, #tpu.memory_space<vmem>>, vector<4x256xf32>,
    %c0_14 = arith.constant 0 : index
    %c0_15 = arith.constant 0 : index
    %44 = vector.load %arg3[%c0_14, %c0_15] : memref<8x36xf32, #tpu.memory_space<vmem>>, vector<8x36xf32>
    %c0_16 = arith.constant 0 : index
    %c0_17 = arith.constant 0 : index
    %45 = vector.load %arg14[%c0_16, %c0_17] : memref<36x256xf32, #tpu.memory_space<vmem>>, vector<36x256xf32>
    %cst = arith.constant dense<0.000000e+00> : vector<8x256xf32>
    %46 = tpu.matmul %44, %45, %cst {dimension_numbers = #tpu.dot_dimension_numbers<[1], [0], [0], [1], [0, 0, 1, 1], [], []>} : vector<8x36xf32>, vector<36x256xf32>, vector<8x256xf32> -> vector<8x256xf32>
    %c0_18 = arith.constant 0 : index
    %c0_19 = arith.constant 0 : index
    %47 = vector.load %arg4[%c0_18, %c0_19] : memref<8x1xf32, #tpu.memory_space<vmem>>, vector<8x1xf32>
    %48 = vector.broadcast %47 : vector<8x1xf32> to vector<8x256xf32>
    %49 = arith.mulf %46, %48 : vector<8x256xf32>
    %c0_20 = arith.constant 0 : index
    %c0_21 = arith.constant 0 : index
    %50 = vector.load %arg5[%c0_20, %c0_21] : memref<8x1xf32, #tpu.memory_space<vmem>>, vector<8x1xf32>
    %51 = vector.broadcast %50 : vector<8x1xf32> to vector<8x256xf32>
    %52 = arith.addf %49, %51 : vector<8x256xf32>
    %cst_22 = arith.constant 0.000000e+00 : f32
    %53 = vector.broadcast %cst_22 : f32 to vector<8x256xf32>
    %54 = arith.maximumf %52, %53 : vector<8x256xf32>
    %c17_i32_23 = arith.constant 17 : i32
    %55 = tpu.dynamic_rotate %54 by %c17_i32_23 dim 1 : vector<8x256xf32>, i32 -> vector<8x256xf32>
    %56 = vector.extract_strided_slice %0 {offsets = [0, 0], sizes = [1, 256], strides = [1, 1]} : vector<9x256xf32> to vector<1x256xf32>
    %57 = vector.broadcast %56 : vector<1x256xf32> to vector<8x256xf32>
    %58 = arith.mulf %55, %57 : vector<8x256xf32>
    %c0_24 = arith.constant 0 : index
    %c0_25 = arith.constant 0 : index
    %59 = vector.load %arg15[%c0_24, %c0_25] : memref<72x256xf32, #tpu.memory_space<vmem>>, vector<8x256xf32>
    tpu.vector_store %arg15[%c0_24, %c0_25], %58 {strides = array<i32>} : memref<72x256xf32, #tpu.memory_space<vmem>>, vector<8x256xf32>,
    %c16_i32_26 = arith.constant 16 : i32
    %60 = tpu.dynamic_rotate %54 by %c16_i32_26 dim 1 : vector<8x256xf32>, i32 -> vector<8x256xf32>
    %61 = vector.extract_strided_slice %0 {offsets = [1, 0], sizes = [1, 256], strides = [1, 1]} : vector<9x256xf32> to vector<1x256xf32>
    %62 = vector.broadcast %61 : vector<1x256xf32> to vector<8x256xf32>
    %63 = arith.mulf %60, %62 : vector<8x256xf32>
    %c8_27 = arith.constant 8 : index
    %c0_28 = arith.constant 0 : index
    %64 = vector.load %arg15[%c8_27, %c0_28] : memref<72x256xf32, #tpu.memory_space<vmem>>, vector<8x256xf32>
    tpu.vector_store %arg15[%c8_27, %c0_28], %63 {strides = array<i32>} : memref<72x256xf32, #tpu.memory_space<vmem>>, vector<8x256xf32>,
    %c15_i32_29 = arith.constant 15 : i32
    %65 = tpu.dynamic_rotate %54 by %c15_i32_29 dim 1 : vector<8x256xf32>, i32 -> vector<8x256xf32>
    %66 = vector.extract_strided_slice %0 {offsets = [2, 0], sizes = [1, 256], strides = [1, 1]} : vector<9x256xf32> to vector<1x256xf32>
    %67 = vector.broadcast %66 : vector<1x256xf32> to vector<8x256xf32>
    %68 = arith.mulf %65, %67 : vector<8x256xf32>
    %c16_30 = arith.constant 16 : index
    %c0_31 = arith.constant 0 : index
    %69 = vector.load %arg15[%c16_30, %c0_31] : memref<72x256xf32, #tpu.memory_space<vmem>>, vector<8x256xf32>
    tpu.vector_store %arg15[%c16_30, %c0_31], %68 {strides = array<i32>} : memref<72x256xf32, #tpu.memory_space<vmem>>, vector<8x256xf32>,
    %c1_i32_32 = arith.constant 1 : i32
    %70 = tpu.dynamic_rotate %54 by %c1_i32_32 dim 1 : vector<8x256xf32>, i32 -> vector<8x256xf32>
    %71 = vector.extract_strided_slice %0 {offsets = [3, 0], sizes = [1, 256], strides = [1, 1]} : vector<9x256xf32> to vector<1x256xf32>
    %72 = vector.broadcast %71 : vector<1x256xf32> to vector<8x256xf32>
    %73 = arith.mulf %70, %72 : vector<8x256xf32>
    %c24_33 = arith.constant 24 : index
    %c0_34 = arith.constant 0 : index
    %74 = vector.load %arg15[%c24_33, %c0_34] : memref<72x256xf32, #tpu.memory_space<vmem>>, vector<8x256xf32>
    tpu.vector_store %arg15[%c24_33, %c0_34], %73 {strides = array<i32>} : memref<72x256xf32, #tpu.memory_space<vmem>>, vector<8x256xf32>,
    %c32_35 = arith.constant 32 : index
    %c0_36 = arith.constant 0 : index
    %75 = vector.load %arg15[%c32_35, %c0_36] : memref<72x256xf32, #tpu.memory_space<vmem>>, vector<8x256xf32>
    tpu.vector_store %arg15[%c32_35, %c0_36], %54 {strides = array<i32>} : memref<72x256xf32, #tpu.memory_space<vmem>>, vector<8x256xf32>,
    %c255_i32_37 = arith.constant 255 : i32
    %76 = tpu.dynamic_rotate %54 by %c255_i32_37 dim 1 : vector<8x256xf32>, i32 -> vector<8x256xf32>
    %77 = vector.extract_strided_slice %0 {offsets = [5, 0], sizes = [1, 256], strides = [1, 1]} : vector<9x256xf32> to vector<1x256xf32>
    %78 = vector.broadcast %77 : vector<1x256xf32> to vector<8x256xf32>
    %79 = arith.mulf %76, %78 : vector<8x256xf32>
    %c40 = arith.constant 40 : index
    %c0_38 = arith.constant 0 : index
    %80 = vector.load %arg15[%c40, %c0_38] : memref<72x256xf32, #tpu.memory_space<vmem>>, vector<8x256xf32>
    tpu.vector_store %arg15[%c40, %c0_38], %79 {strides = array<i32>} : memref<72x256xf32, #tpu.memory_space<vmem>>, vector<8x256xf32>,
    %c241_i32_39 = arith.constant 241 : i32
    %81 = tpu.dynamic_rotate %54 by %c241_i32_39 dim 1 : vector<8x256xf32>, i32 -> vector<8x256xf32>
    %82 = vector.extract_strided_slice %0 {offsets = [6, 0], sizes = [1, 256], strides = [1, 1]} : vector<9x256xf32> to vector<1x256xf32>
    %83 = vector.broadcast %82 : vector<1x256xf32> to vector<8x256xf32>
    %84 = arith.mulf %81, %83 : vector<8x256xf32>
    %c48 = arith.constant 48 : index
    %c0_40 = arith.constant 0 : index
    %85 = vector.load %arg15[%c48, %c0_40] : memref<72x256xf32, #tpu.memory_space<vmem>>, vector<8x256xf32>
    tpu.vector_store %arg15[%c48, %c0_40], %84 {strides = array<i32>} : memref<72x256xf32, #tpu.memory_space<vmem>>, vector<8x256xf32>,
    %c240_i32_41 = arith.constant 240 : i32
    %86 = tpu.dynamic_rotate %54 by %c240_i32_41 dim 1 : vector<8x256xf32>, i32 -> vector<8x256xf32>
    %87 = vector.extract_strided_slice %0 {offsets = [7, 0], sizes = [1, 256], strides = [1, 1]} : vector<9x256xf32> to vector<1x256xf32>
    %88 = vector.broadcast %87 : vector<1x256xf32> to vector<8x256xf32>
    %89 = arith.mulf %86, %88 : vector<8x256xf32>
    %c56 = arith.constant 56 : index
    %c0_42 = arith.constant 0 : index
    %90 = vector.load %arg15[%c56, %c0_42] : memref<72x256xf32, #tpu.memory_space<vmem>>, vector<8x256xf32>
    tpu.vector_store %arg15[%c56, %c0_42], %89 {strides = array<i32>} : memref<72x256xf32, #tpu.memory_space<vmem>>, vector<8x256xf32>,
    %c239_i32_43 = arith.constant 239 : i32
    %91 = tpu.dynamic_rotate %54 by %c239_i32_43 dim 1 : vector<8x256xf32>, i32 -> vector<8x256xf32>
    %92 = vector.extract_strided_slice %0 {offsets = [8, 0], sizes = [1, 256], strides = [1, 1]} : vector<9x256xf32> to vector<1x256xf32>
    %93 = vector.broadcast %92 : vector<1x256xf32> to vector<8x256xf32>
    %94 = arith.mulf %91, %93 : vector<8x256xf32>
    %c64 = arith.constant 64 : index
    %c0_44 = arith.constant 0 : index
    %95 = vector.load %arg15[%c64, %c0_44] : memref<72x256xf32, #tpu.memory_space<vmem>>, vector<8x256xf32>
    tpu.vector_store %arg15[%c64, %c0_44], %94 {strides = array<i32>} : memref<72x256xf32, #tpu.memory_space<vmem>>, vector<8x256xf32>,
    %c0_45 = arith.constant 0 : index
    %c0_46 = arith.constant 0 : index
    %96 = vector.load %arg6[%c0_45, %c0_46] : memref<16x72xf32, #tpu.memory_space<vmem>>, vector<16x72xf32>
    %c0_47 = arith.constant 0 : index
    %c0_48 = arith.constant 0 : index
    %97 = vector.load %arg15[%c0_47, %c0_48] : memref<72x256xf32, #tpu.memory_space<vmem>>, vector<72x256xf32>
    %cst_49 = arith.constant dense<0.000000e+00> : vector<16x256xf32>
    %98 = tpu.matmul %96, %97, %cst_49 {dimension_numbers = #tpu.dot_dimension_numbers<[1], [0], [0], [1], [0, 0, 1, 1], [], []>} : vector<16x72xf32>, vector<72x256xf32>, vector<16x256xf32> -> vector<16x256xf32>
    %c0_50 = arith.constant 0 : index
    %c0_51 = arith.constant 0 : index
    %99 = vector.load %arg7[%c0_50, %c0_51] : memref<16x1xf32, #tpu.memory_space<vmem>>, vector<16x1xf32>
    %100 = vector.broadcast %99 : vector<16x1xf32> to vector<16x256xf32>
    %101 = arith.mulf %98, %100 : vector<16x256xf32>
    %c0_52 = arith.constant 0 : index
    %c0_53 = arith.constant 0 : index
    %102 = vector.load %arg8[%c0_52, %c0_53] : memref<16x1xf32, #tpu.memory_space<vmem>>, vector<16x1xf32>
    %103 = vector.broadcast %102 : vector<16x1xf32> to vector<16x256xf32>
    %104 = arith.addf %101, %103 : vector<16x256xf32>
    %cst_54 = arith.constant 0.000000e+00 : f32
    %105 = vector.broadcast %cst_54 : f32 to vector<16x256xf32>
    %106 = arith.maximumf %104, %105 : vector<16x256xf32>
    %c0_55 = arith.constant 0 : index
    %c0_56 = arith.constant 0 : index
    %107 = vector.load %arg9[%c0_55, %c0_56] : memref<256x784xf32, #tpu.memory_space<vmem>>, vector<256x784xf32>
    %cst_57 = arith.constant dense<0.000000e+00> : vector<16x784xf32>
    %108 = tpu.matmul %106, %107, %cst_57 {dimension_numbers = #tpu.dot_dimension_numbers<[1], [0], [0], [1], [0, 0, 1, 1], [], []>} : vector<16x256xf32>, vector<256x784xf32>, vector<16x784xf32> -> vector<16x784xf32>
    %c0_58 = arith.constant 0 : index
    %c0_59 = arith.constant 0 : index
    %109 = vector.load %arg10[%c0_58, %c0_59] : memref<16x784xf32, #tpu.memory_space<vmem>>, vector<16x784xf32>
    %110 = arith.mulf %108, %109 : vector<16x784xf32>
    %c0_60 = arith.constant 0 : index
    %c0_61 = arith.constant 0 : index
    %111 = vector.load %arg11[%c0_60, %c0_61] : memref<784x128xf32, #tpu.memory_space<vmem>>, vector<784x128xf32>
    %cst_62 = arith.constant dense<0.000000e+00> : vector<16x128xf32>
    %112 = tpu.matmul %110, %111, %cst_62 {dimension_numbers = #tpu.dot_dimension_numbers<[1], [0], [0], [1], [0, 0, 1, 1], [], []>} : vector<16x784xf32>, vector<784x128xf32>, vector<16x128xf32> -> vector<16x128xf32>
    %cst_63 = arith.constant dense<0.000000e+00> : vector<128xf32>
    %113 = vector.multi_reduction <add>, %112, %cst_63 [0] : vector<16x128xf32> to vector<128xf32>
    %114 = vector.shape_cast %113 : vector<128xf32> to vector<1x128xf32>
    %c0_64 = arith.constant 0 : index
    %c0_65 = arith.constant 0 : index
    %115 = vector.load %arg12[%c0_64, %c0_65] : memref<1x128xf32, #tpu.memory_space<vmem>>, vector<1x128xf32>
    %116 = arith.addf %114, %115 : vector<1x128xf32>
    %c0_66 = arith.constant 0 : index
    %c0_67 = arith.constant 0 : index
    %c0_68 = arith.constant 0 : index
    %117 = vector.load %arg13[%c0_66, %c0_67, %c0_68] : memref<1x1x128xf32, #tpu.memory_space<vmem>>, vector<1x1x128xf32>
    %118 = vector.shape_cast %117 : vector<1x1x128xf32> to vector<1x128xf32>
    %119 = vector.shape_cast %116 : vector<1x128xf32> to vector<1x1x128xf32>
    tpu.vector_store %arg13[%c0_66, %c0_67, %c0_68], %119 {strides = array<i32>} : memref<1x1x128xf32, #tpu.memory_space<vmem>>, vector<1x1x128xf32>,
    return
  }
  func.func @transform_0(%arg0: i32) -> (i32, i32, i32) {
    %c0_i32 = arith.constant 0 : i32
    %c0_i32_0 = arith.constant 0 : i32
    %c0_i32_1 = arith.constant 0 : i32
    return %arg0, %c0_i32, %c0_i32_0 : i32, i32, i32
  }
  func.func @transform_1(%arg0: i32) -> (i32, i32) {
    %c0_i32 = arith.constant 0 : i32
    %c0_i32_0 = arith.constant 0 : i32
    %c0_i32_1 = arith.constant 0 : i32
    return %c0_i32, %c0_i32_0 : i32, i32
  }
  func.func @transform_2(%arg0: i32) -> (i32, i32) {
    %c0_i32 = arith.constant 0 : i32
    %c0_i32_0 = arith.constant 0 : i32
    %c0_i32_1 = arith.constant 0 : i32
    return %c0_i32, %c0_i32_0 : i32, i32
  }
  func.func @transform_3(%arg0: i32) -> (i32, i32) {
    %c0_i32 = arith.constant 0 : i32
    %c0_i32_0 = arith.constant 0 : i32
    %c0_i32_1 = arith.constant 0 : i32
    return %c0_i32, %c0_i32_0 : i32, i32
  }
  func.func @transform_4(%arg0: i32) -> (i32, i32) {
    %c0_i32 = arith.constant 0 : i32
    %c0_i32_0 = arith.constant 0 : i32
    %c0_i32_1 = arith.constant 0 : i32
    return %c0_i32, %c0_i32_0 : i32, i32
  }
  func.func @transform_5(%arg0: i32) -> (i32, i32) {
    %c0_i32 = arith.constant 0 : i32
    %c0_i32_0 = arith.constant 0 : i32
    %c0_i32_1 = arith.constant 0 : i32
    return %c0_i32, %c0_i32_0 : i32, i32
  }
  func.func @transform_6(%arg0: i32) -> (i32, i32) {
    %c0_i32 = arith.constant 0 : i32
    %c0_i32_0 = arith.constant 0 : i32
    %c0_i32_1 = arith.constant 0 : i32
    return %c0_i32, %c0_i32_0 : i32, i32
  }
  func.func @transform_7(%arg0: i32) -> (i32, i32) {
    %c0_i32 = arith.constant 0 : i32
    %c0_i32_0 = arith.constant 0 : i32
    %c0_i32_1 = arith.constant 0 : i32
    return %c0_i32, %c0_i32_0 : i32, i32
  }
  func.func @transform_8(%arg0: i32) -> (i32, i32) {
    %c0_i32 = arith.constant 0 : i32
    %c0_i32_0 = arith.constant 0 : i32
    %c0_i32_1 = arith.constant 0 : i32
    return %c0_i32, %c0_i32_0 : i32, i32
  }
  func.func @transform_9(%arg0: i32) -> (i32, i32) {
    %c0_i32 = arith.constant 0 : i32
    %c0_i32_0 = arith.constant 0 : i32
    %c0_i32_1 = arith.constant 0 : i32
    return %c0_i32, %c0_i32_0 : i32, i32
  }
  func.func @transform_10(%arg0: i32) -> (i32, i32) {
    %c0_i32 = arith.constant 0 : i32
    %c0_i32_0 = arith.constant 0 : i32
    %c0_i32_1 = arith.constant 0 : i32
    return %c0_i32, %c0_i32_0 : i32, i32
  }
  func.func @transform_11(%arg0: i32) -> (i32, i32) {
    %c0_i32 = arith.constant 0 : i32
    %c0_i32_0 = arith.constant 0 : i32
    %c0_i32_1 = arith.constant 0 : i32
    return %c0_i32, %c0_i32_0 : i32, i32
  }
  func.func @transform_12(%arg0: i32) -> (i32, i32, i32) {
    %c0_i32 = arith.constant 0 : i32
    %c0_i32_0 = arith.constant 0 : i32
    %c0_i32_1 = arith.constant 0 : i32
    return %arg0, %c0_i32, %c0_i32_0 : i32, i32, i32
  }
}

</mosaic_0001>

<bundles_post_ra>
// kernel: tpu_custom_call.1
= control target key start
LH: loop header
LB: loop body
LE: loop exit
PB: predicated region body
PF: predicated region fallthrough
CT: control target
= control target key end

     0   :  { %s4087_s0 = inlined_call_operand.vmem [shape: f32[2,4,256], index: 0, kind: input, shape index: {}]   ;;  %s4088_s1 = inlined_call_operand.vmem [shape: f32[9,256], index: 1, kind: input, shape index: {}]   ;;  %s4089_s2 = inlined_call_operand.vmem [shape: f32[8,36], index: 2, kind: input, shape index: {}]   ;;  %s4090_s3 = inlined_call_operand.vmem [shape: f32[8,1], index: 3, kind: input, shape index: {}]   ;;  %s4091_s4 = inlined_call_operand.vmem [shape: f32[8,1], index: 4, kind: input, shape index: {}]   ;;  %s4092_s5 = inlined_call_operand.vmem [shape: f32[16,72], index: 5, kind: input, shape index: {}]   ;;  %s4093_s6 = inlined_call_operand.vmem [shape: f32[16,1], index: 6, kind: input, shape index: {}]   ;;  %s4094_s7 = inlined_call_operand.vmem [shape: f32[16,1], index: 7, kind: input, shape index: {}]   ;;  %s4095_s8 = inlined_call_operand.vmem [shape: f32[256,784], index: 8, kind: input, shape index: {}]   ;;  %s4096_s9 = inlined_call_operand.vmem [shape: f32[16,784], index: 9, kind: input, shape index: {}]   ;;  %s4097_s10 = inlined_call_operand.vmem [shape: f32[784,128], index: 10, kind: input, shape index: {}]   ;;  %s4098_s11 = inlined_call_operand.vmem [shape: f32[1,128], index: 11, kind: input, shape index: {}]   ;;  %s4099_s12 = inlined_call_operand.hbm [shape: f32[2,1,128], index: 12, kind: output, shape index: {}]  }
   0x1   :  { %4110 = sst [smem:[#allocation7_spill]] %s4087_s0 }
   0x2   :  { %4111 = sst [smem:[#allocation8_spill]] %s4088_s1 }
   0x3   :  { %4112 = sst [smem:[#allocation9_spill]] %s4089_s2 }
   0x4   :  { %17 = vsyncpa [#allocation5], 0 }
   0x5   :  { %19 = vsyncpa [#allocation5 + $0x1], 0  ;;  %s2695_s21 = smov 0   ;;  %s2697_s22 = smov 0  }
   0x6   :  { %s2699_s23 = smov 0   ;;  %s2701_s24 = smov 0  }
   0x7 LB: > { %s2716_s25 = sadd.s32 4294967295, %s2617_s24   ;;  %s1973_s26 = sadd.s32 4294967294, %s2617_s24   ;;  %s2617_s24 = sphi %s2701_s24, %s4126_s24   ;;  %s2613_s23 = sphi %s2699_s23, %s4125_s23   ;;  %s2609_s22 = sphi %s2697_s22, %s4124_s22   ;;  %s2605_s21 = sphi %s2695_s21, %s4123_s21  }
   0x8   : > { %s2720_s27 = sadd.s32 1, %s2617_s24   ;;  %s289_s28 = sadd.s32 1, %s2613_s23 }
   0x9   : > { %s286_s29 = ssub.s32 %s2617_s24, %s2720_s27  ;;  %p299_p0 = scmp.ne.s32.totalorder %s2613_s23, %s2609_s22 }
   0xa   : > { %p287_p1 = scmp.eq.s32.totalorder %s286_s29, 0  ;;  %p300_p2 = scmp.eq.s32.totalorder %s2716_s25, 1 }
   0xb   : > { %p305_p3 = scmp.ne.s32.totalorder %s2609_s22, %s2605_s21  ;;  %p306_p4 = scmp.eq.s32.totalorder %s1973_s26, 1 }
   0xc   : > { %s2731_s30 = scalar_select %p287_p1, %s2613_s23, %s289_s28  }
   0xd   : > { %p2733_p5 = por %p300_p2, %p299_p0  ;;  %p2737_p6 = por %p306_p4, %p305_p3 }
   0xe   : > { %p1976_p7 = scmp.ge.s32.totalorder %s2617_s24, 1  ;;  %p365_p8 = scmp.lt.s32.totalorder %s2617_s24, 3 }
  0x10   : > { %p366_p9 = pnand %p1976_p7, %p365_p8 }
  0x11   : > { %p406_p10 = scmp.lt.s32.totalorder (!%p366_p9), %s2716_s25, 1  ;;  %s4115_s0 = sld [smem:[#allocation7_spill]] (!%p366_p9)  ;;  %v2627_v2 = vmov (!%p366_p9), 0.0   ;;  %v692_v3 = vld [vmem:[%s4090_s3] sm:$0xff] (!%p366_p9)  ;;  %v2628_v5 = vmov (!%p366_p9), 0   ;;  %v423_v6 = vlaneseq (!%p366_p9)  ;;  %vm614_vm8 = vcmask (!%p366_p9), 1043456  }
  0x12   : > { %369 = sbr.rel (%p366_p9) target bundleno = 1310 (0x51e), region = 68  ;;  %s4104_s20 = smov (!%p366_p9), 1   ;;  %685 = vmatprep.mubr.f32.mxu0 (!%p366_p9), %v2627_v2  ;;  %883 = vmatprep.mubr.f32.mxu1 (!%p366_p9), %v2627_v2  ;;  %v700_v4 = vld [vmem:[%s4091_s4] sm:$0xff] (!%p366_p9)  ;;  %vm610_vm9 = vcmask (!%p366_p9), 293888   ;;  %vm812_vm10 = vcmask (!%p366_p9), 588800   ;;  %vm1588_vm11 = vcmask (!%p366_p9), 130048  }
  0x13   : > { %s2620_s26 = smov (!%p366_p9), 16   ;;  %s2621_s28 = smov (!%p366_p9), 17   ;;  %2552 = vset.pattern.permute.xlu0 (!%p366_p9), %v2628_v5  ;;  %2553 = vset.pattern.permute.xlu1 (!%p366_p9), %v2628_v5  ;;  %v2772_v7 = vshrl.u32 (!%p366_p9), %v423_v6, 7  ;;  %v2774_v8 = vand.u32 (!%p366_p9), 127, %v423_v6 }
  0x14   : > { %s2622_s29 = smov (!%p366_p9), 15   ;;  %s4108_s17 = smov (!%p366_p9), 113  }
  0x15   : > { %s4106_s18 = smov (!%p366_p9), 111   ;;  %v493_v9 = vsub.s32 (!%p366_p9), 3, %v2772_v7  ;;  %s4116_s1 = sld [smem:[#allocation8_spill]] (!%p366_p9)  ;;  %v430_v14 = vsub.s32 (!%p366_p9), 0, %v2772_v7  ;;  %vm488_vm0 = vcmp.lt.s32.totalorder (!%p366_p9), %v2774_v8, 1  ;;  %v449_v17 = vsub.s32 (!%p366_p9), 1, %v2772_v7 }
  0x16   : > { %vm425_vm1 = vcmp.lt.s32.totalorder (!%p366_p9), %v2774_v8, 17  ;;  %vm444_vm2 = vcmp.lt.s32.totalorder (!%p366_p9), %v2774_v8, 16  ;;  %v474_v20 = vsub.s32 (!%p366_p9), 2, %v2772_v7  ;;  %vm469_vm3 = vcmp.lt.s32.totalorder (!%p366_p9), %v2774_v8, 15  ;;  %s4117_s2 = sld [smem:[#allocation9_spill]] (!%p366_p9) }
  0x17   : > { %v520_v29 = vsub.s32 (!%p366_p9), 5, %v2772_v7  ;;  %vm515_vm4 = vcmp.lt.s32.totalorder (!%p366_p9), %v2774_v8, 127  ;;  %v564_v50 = vsub.s32 (!%p366_p9), 7, %v2772_v7  ;;  %vm559_vm5 = vcmp.lt.s32.totalorder (!%p366_p9), %v2774_v8, 112 }
  0x18   : > { %v545_v63 = vsub.s32 (!%p366_p9), 6, %v2772_v7  ;;  %vm540_vm6 = vcmp.lt.s32.totalorder (!%p366_p9), %v2774_v8, 113  ;;  %vm584_vm7 = vcmp.lt.s32.totalorder (!%p366_p9), %v2774_v8, 111  ;;  %v956_v8 = vld [vmem:[%s4095_s8 + $0xc0] sm:$0xff] (!%p366_p9) }
  0x19   : > { %s407_s15 = scalar_select %p406_p10, %s2716_s25, 1 }
  0x1b   : > { %s1991_s16 = sshll.u32 %s407_s15, 3  ;;  %s4100_s15 = smov 127   ;;  %v2780_v10 = vld [vmem:[%s4116_s1] sm:$0xff]  ;;  %v2785_v11 = vld [vmem:[%s4116_s1 + $0x8] sm:$0xff] }
  0x1c   : > { %s410_s19 = scalar_lea.vmem %s4115_s0, %s1991_s16  ;;  %s4102_s16 = smov 112   ;;  %v2790_v15 = vrot.slane %v2780_v10, %v493_v9  ;;  %v2793_v16 = vrot.slane %v2785_v11, %v493_v9  ;;  %v2804_v23 = vrot.slane %v2780_v10, %v430_v14  ;;  %v2807_v24 = vrot.slane %v2785_v11, %v430_v14 }
  0x1d   : > { %v415_v0 = vld [vmem:[%s410_s19] sm:$0xff]  ;;  %v2812_v27 = vrot.slane %v2780_v10, %v449_v17  ;;  %v2815_v28 = vrot.slane %v2785_v11, %v449_v17  ;;  %v2820_v34 = vrot.slane %v2780_v10, %v474_v20  ;;  %v2823_v35 = vrot.slane %v2785_v11, %v474_v20  ;;  %s404_s0 = sand.u32 1, %s2609_s22  }
  0x1e   : > { %484 = vrot.lane.b32.xlu1 %v415_v0, %s4104_s20  ;;  %509 = vst [vmem:[#allocation2 + $0x20] sm:$0xf] %v415_v0  ;;  %440 = vrot.lane.b32.xlu0 %v415_v0, %s2620_s26  ;;  %v417_v1 = vcombine.high %v415_v0, %v415_v0  ;;  %v2846_v53 = vrot.slane %v2780_v10, %v520_v29  ;;  %s405_s19 = scalar_lea.vmem [#allocation4], %s404_s0 }
  0x1f   : > { %v2849_v54 = vrot.slane %v2785_v11, %v520_v29  ;;  %v2857_v59 = vrot.slane %v2780_v10, %v564_v50  ;;  %v2862_v62 = vrot.slane %v2785_v11, %v564_v50  ;;  %v2873_v7 = vrot.slane %v2780_v10, %v545_v63  ;;  %v599_v50 = vld [vmem:[%s4117_s2] sm:$0xff] }
  0x20   : > { %510 = vst [vmem:[#allocation2 + $0x28] sm:$0xf] %v417_v1 }
  0x22   : > { %419 = vrot.lane.b32.xlu0 %v415_v0, %s2621_s28  ;;  %486 = vrot.lane.b32.xlu1 %v417_v1, %s4104_s20 }
  0x26   : > { %421 = vrot.lane.b32.xlu1 %v417_v1, %s2621_s28  ;;  %442 = vrot.lane.b32.xlu0 %v417_v1, %s2620_s26 }
  0x2a   : > { %467 = vrot.lane.b32.xlu1 %v417_v1, %s2622_s29  ;;  %465 = vrot.lane.b32.xlu0 %v415_v0, %s2622_s29 }
  0x2e   : > { %513 = vrot.lane.b32.xlu1 %v417_v1, %s4100_s15  ;;  %511 = vrot.lane.b32.xlu0 %v415_v0, %s4100_s15  ;;  %s1918_s15 = sshll.u32 %s405_s19, 4  ;;  %s4047_s15 = int_to_ptr.vmem [resolvable:$true] %s1918_s15 }
  0x32   : > { %557 = vrot.lane.b32.xlu1 %v417_v1, %s4102_s16  ;;  %555 = vrot.lane.b32.xlu0 %v415_v0, %s4102_s16  ;;  %s4118_s16 = smov 1  }
  0x36   : > { %538 = vrot.lane.b32.xlu1 %v417_v1, %s4108_s17  ;;  %536 = vrot.lane.b32.xlu0 %v415_v0, %s4108_s17  ;;  %s4119_s17 = smov 127  }
  0x3a   : > { %582 = vrot.lane.b32.xlu1 %v417_v1, %s4106_s18  ;;  %580 = vrot.lane.b32.xlu0 %v415_v0, %s4106_s18  ;;  %s1988_s18 = sshll.u32 %s2716_s25, 4  ;;  %s2629_s25 = smov [#allocation4]  }
  0x3e   : > { %695 = vperm.xlu0 %2552, %v692_v3   ;;  %703 = vperm.xlu1 %2553, %v700_v4  }
  0x90   : > { %v485_v12 = vpop.permute.xlu1 %484  ;;  %v441_v13 = vpop.permute.xlu0 %440 }
  0x94   : > { %v420_v18 = vpop.permute.xlu0 %419  ;;  %v487_v19 = vpop.permute.xlu1 %486 }
  0x95   : > { %v489_v21 = vsel %vm488_vm0, %v485_v12, %v487_v19  ;;  %v490_v22 = vsel %vm488_vm0, %v487_v19, %v485_v12 }
  0x96   : > { %v499_v25 = vmul.f32 %v2790_v15, %v490_v22  ;;  %v500_v26 = vmul.f32 %v2793_v16, %v489_v21 }
  0x98   : > { %v503_v30 = vrot.slane %v499_v25, 4  ;;  %v504_v31 = vrot.slane %v500_v26, 4  ;;  %v422_v32 = vpop.permute.xlu1 %421  ;;  %v443_v33 = vpop.permute.xlu0 %442 }
  0x99   : > { %v426_v36 = vsel %vm425_vm1, %v420_v18, %v422_v32  ;;  %v427_v37 = vsel %vm425_vm1, %v422_v32, %v420_v18  ;;  %v445_v38 = vsel %vm444_vm2, %v441_v13, %v443_v33  ;;  %v446_v39 = vsel %vm444_vm2, %v443_v33, %v441_v13  ;;  %v2888_v32 = vld [vmem:[%s4116_s1 + $0x10] ss:$0 sm:$0xff]  ;;  %v2893_v33 = vld [vmem:[%s4116_s1 + $0x18] ss:$0 sm:$0xff] }
  0x9a   : > { %507 = vst [vmem:[#allocation2 + $0x10] sm:$0xf0] %v503_v30  ;;  %508 = vst [vmem:[#allocation2 + $0x18] sm:$0xf0] %v504_v31  ;;  %v436_v40 = vmul.f32 %v2804_v23, %v427_v37  ;;  %v437_v41 = vmul.f32 %v2807_v24, %v426_v36  ;;  %v455_v42 = vmul.f32 %v2812_v27, %v446_v39 }
  0x9b   : > { %v456_v43 = vmul.f32 %v2815_v28, %v445_v38  ;;  %v2876_v13 = vrot.slane %v2785_v11, %v545_v63 }
  0x9c   : > { %438 = vst [vmem:[#allocation2] sm:$0xf] %v436_v40  ;;  %439 = vst [vmem:[#allocation2 + $0x8] sm:$0xf] %v437_v41  ;;  %v459_v44 = vrot.slane %v455_v42, 4  ;;  %v468_v46 = vpop.permute.xlu1 %467  ;;  %v466_v47 = vpop.permute.xlu0 %465 }
  0x9d   : > { %v460_v45 = vrot.slane %v456_v43, 4  ;;  %v470_v48 = vsel %vm469_vm3, %v466_v47, %v468_v46  ;;  %v471_v49 = vsel %vm469_vm3, %v468_v46, %v466_v47 }
  0x9e   : > { %463 = vst [vmem:[#allocation2] sm:$0xf0] %v459_v44  ;;  %v480_v51 = vmul.f32 %v2820_v34, %v471_v49  ;;  %v481_v52 = vmul.f32 %v2823_v35, %v470_v48 }
  0x9f   : > { %464 = vst [vmem:[#allocation2 + $0x8] sm:$0xf0] %v460_v45 }
  0xa0   : > { %482 = vst [vmem:[#allocation2 + $0x10] sm:$0xf] %v480_v51  ;;  %483 = vst [vmem:[#allocation2 + $0x18] sm:$0xf] %v481_v52  ;;  %v514_v55 = vpop.permute.xlu1 %513  ;;  %v512_v56 = vpop.permute.xlu0 %511 }
  0xa1   : > { %v516_v57 = vsel %vm515_vm4, %v512_v56, %v514_v55  ;;  %v517_v58 = vsel %vm515_vm4, %v514_v55, %v512_v56 }
  0xa2   : > { %v526_v60 = vmul.f32 %v2846_v53, %v516_v57  ;;  %v527_v61 = vmul.f32 %v2849_v54, %v517_v58 }
  0xa4   : > { %v530_v0 = vrot.slane %v526_v60, 4  ;;  %v531_v1 = vrot.slane %v527_v61, 4  ;;  %v558_v3 = vpop.permute.xlu1 %557  ;;  %v556_v4 = vpop.permute.xlu0 %555 }
  0xa5   : > { %v560_v5 = vsel %vm559_vm5, %v556_v4, %v558_v3  ;;  %v561_v6 = vsel %vm559_vm5, %v558_v3, %v556_v4  ;;  %v600_v18 = vld [vmem:[#allocation2] sm:$0xff]  ;;  %v897_v4 = vld [vmem:[%s4093_s6 + $0x8] sm:$0xff] }
  0xa6   : > { %534 = vst [vmem:[#allocation2 + $0x20] sm:$0xf0] %v530_v0  ;;  %535 = vst [vmem:[#allocation2 + $0x28] sm:$0xf0] %v531_v1  ;;  %v570_v9 = vmul.f32 %v2857_v59, %v560_v5  ;;  %v571_v12 = vmul.f32 %v2862_v62, %v561_v6  ;;  %v601_v14 = vld [vmem:[#allocation2 + $0x8] sm:$0xff]  ;;  %v896_v1 = vld [vmem:[%s4093_s6] sm:$0xff] }
  0xa7   : > { %v603_v17 = vld [vmem:[#allocation2 + $0x18] sm:$0xff]  ;;  %v602_v19 = vld [vmem:[#allocation2 + $0x10] sm:$0xff]  ;;  %v912_v3 = vld [vmem:[%s4094_s7] sm:$0xff] }
  0xa8   : > { %v574_v20 = vrot.slane %v570_v9, 4  ;;  %v575_v21 = vrot.slane %v571_v12, 4  ;;  %v539_v22 = vpop.permute.xlu1 %538  ;;  %v537_v25 = vpop.permute.xlu0 %536  ;;  %v2155_v26 = vpack.c.bf16 %v603_v17, %v601_v14  ;;  %v2157_v29 = vpack.c.bf16 %v602_v19, %v600_v18  ;;  %v913_v5 = vld [vmem:[%s4094_s7 + $0x8] sm:$0xff]  ;;  %v940_v9 = vld [vmem:[%s4095_s8 + $0x40] sm:$0xff]  ;;  %v939_v17 = vld [vmem:[%s4095_s8 + $0x38] sm:$0xff] }
  0xa9   : > { %v541_v30 = vsel %vm540_vm6, %v537_v25, %v539_v22  ;;  %v542_v10 = vsel %vm540_vm6, %v539_v22, %v537_v25  ;;  %v933_v6 = vld [vmem:[%s4095_s8 + $0x8] sm:$0xff]  ;;  %v932_v14 = vld [vmem:[%s4095_s8] sm:$0xff]  ;;  %v947_v19 = vld [vmem:[%s4095_s8 + $0x78] sm:$0xff] }
  0xaa   : > { %578 = vst [vmem:[#allocation2 + $0x30] sm:$0xf0] %v574_v20  ;;  %579 = vst [vmem:[#allocation2 + $0x38] sm:$0xf0] %v575_v21  ;;  %v551_v11 = vmul.f32 %v2873_v7, %v541_v30  ;;  %v552_v31 = vmul.f32 %v2876_v13, %v542_v10  ;;  %2156 = vmatprep.subr.bf16.mxu0 %v2155_v26  ;;  %v2179_v12 = vpack.c.bf16 %v940_v9, %v933_v6  ;;  %v954_v20 = vld [vmem:[%s4095_s8 + $0xb0] sm:$0xff]  ;;  %v953_v25 = vld [vmem:[%s4095_s8 + $0xa8] sm:$0xff] }
  0xab   : > { %2158 = vmatpush1.bf16.msra.mxu0 %v2157_v29  ;;  %v2181_v18 = vpack.c.bf16 %v939_v17, %v932_v14  ;;  %v2183_v21 = vpack.c.bf16 %v954_v20, %v947_v19  ;;  %v946_v22 = vld [vmem:[%s4095_s8 + $0x70] sm:$0xff]  ;;  %v961_v29 = vld [vmem:[%s4095_s8 + $0xe8] sm:$0xff]  ;;  %v968_v30 = vld [vmem:[%s4095_s8 + $0x120] sm:$0xff] }
  0xac   : > { %553 = vst [vmem:[#allocation2 + $0x30] sm:$0xf] %v551_v11  ;;  %554 = vst [vmem:[#allocation2 + $0x38] sm:$0xf] %v552_v31  ;;  %v583_v36 = vpop.permute.xlu1 %582  ;;  %v581_v37 = vpop.permute.xlu0 %580  ;;  %v2185_v26 = vpack.c.bf16 %v953_v25, %v946_v22  ;;  %v2187_v10 = vpack.c.bf16 %v968_v30, %v961_v29  ;;  %v960_v11 = vld [vmem:[%s4095_s8 + $0xe0] sm:$0xff]  ;;  %v967_v31 = vld [vmem:[%s4095_s8 + $0x118] sm:$0xff] }
  0xad   : > { %v585_v38 = vsel %vm584_vm7, %v581_v37, %v583_v36  ;;  %v586_v39 = vsel %vm584_vm7, %v583_v36, %v581_v37  ;;  %v605_v42 = vld [vmem:[#allocation2 + $0x28] sm:$0xff]  ;;  %v604_v44 = vld [vmem:[#allocation2 + $0x20] sm:$0xff]  ;;  %v2189_v36 = vpack.c.bf16 %v967_v31, %v960_v11  ;;  %v975_v37 = vld [vmem:[%s4095_s8 + $0x158] sm:$0xff] }
  0xae   : > { %v595_v40 = vmul.f32 %v2888_v32, %v585_v38  ;;  %v596_v41 = vmul.f32 %v2893_v33, %v586_v39  ;;  %v982_v38 = vld [vmem:[%s4095_s8 + $0x190] sm:$0xff]  ;;  %v1045_v14 = vld [vmem:[%s4095_s8 + $0x388] sm:$0xff]  ;;  %v1052_v17 = vld [vmem:[%s4095_s8 + $0x3c0] sm:$0xff] }
  0xaf   : > { %v2191_v39 = vpack.c.bf16 %v982_v38, %v975_v37  ;;  %v1030_v9 = vld [vmem:[%s4095_s8 + $0x310] sm:$0xff]  ;;  %v2211_v19 = vpack.c.bf16 %v1052_v17, %v1045_v14  ;;  %v1044_v20 = vld [vmem:[%s4095_s8 + $0x380] sm:$0xff]  ;;  %v1059_v22 = vld [vmem:[%s4095_s8 + $0x3f8] sm:$0xff] }
  0xb0   : > { %597 = vst [vmem:[#allocation2 + $0x40] sm:$0xf] %v595_v40  ;;  %598 = vst [vmem:[#allocation2 + $0x48] sm:$0xf] %v596_v41  ;;  %v974_v40 = vld [vmem:[%s4095_s8 + $0x150] sm:$0xff]  ;;  %v981_v41 = vld [vmem:[%s4095_s8 + $0x188] sm:$0xff] }
  0xb1   : > { %v1066_v25 = vld [vmem:[%s4095_s8 + $0x430] sm:$0xff]  ;;  %v1073_v11 = vld [vmem:[%s4095_s8 + $0x468] sm:$0xff]  ;;  %v1080_v31 = vld [vmem:[%s4095_s8 + $0x4a0] sm:$0xff] }
  0xb2   : > { %v2215_v29 = vpack.c.bf16 %v1066_v25, %v1059_v22  ;;  %v1058_v30 = vld [vmem:[%s4095_s8 + $0x3f0] sm:$0xff]  ;;  %v2219_v37 = vpack.c.bf16 %v1080_v31, %v1073_v11  ;;  %v1072_v38 = vld [vmem:[%s4095_s8 + $0x460] sm:$0xff] }
  0xb3   : > { %v607_v43 = vld [vmem:[#allocation2 + $0x38] sm:$0xff]  ;;  %v606_v45 = vld [vmem:[#allocation2 + $0x30] sm:$0xff] }
  0xb4   : > { %v2159_v46 = vpack.c.bf16 %v607_v43, %v605_v42  ;;  %v2161_v47 = vpack.c.bf16 %v606_v45, %v604_v44  ;;  %v989_v42 = vld [vmem:[%s4095_s8 + $0x1c8] sm:$0xff]  ;;  %v996_v43 = vld [vmem:[%s4095_s8 + $0x200] sm:$0xff]  ;;  %v2193_v44 = vpack.c.bf16 %v981_v41, %v974_v40  ;;  %v1087_v40 = vld [vmem:[%s4095_s8 + $0x4d8] sm:$0xff] }
  0xb5   : > { %v2195_v45 = vpack.c.bf16 %v996_v43, %v989_v42  ;;  %v1094_v41 = vld [vmem:[%s4095_s8 + $0x510] sm:$0xff] }
  0xb6   : > { %2160 = vmatprep.subr.bf16.mxu0 %v2159_v46  ;;  %v988_v46 = vld [vmem:[%s4095_s8 + $0x1c0] sm:$0xff]  ;;  %v2223_v43 = vpack.c.bf16 %v1094_v41, %v1087_v40 }
  0xb7   : > { %2162 = vmatpush1.bf16.msra.mxu0 %v2161_v47  ;;  %v609_v48 = vld [vmem:[#allocation2 + $0x48] sm:$0xf]  ;;  %v608_v49 = vld [vmem:[#allocation2 + $0x40] sm:$0xf]  ;;  %v995_v47 = vld [vmem:[%s4095_s8 + $0x1f8] sm:$0xff] }
  0xb8   : > { %1981 = vmatprep.subr.msk.mxu0 %vm614_vm8, %v609_v48  ;;  %v1003_v48 = vld [vmem:[%s4095_s8 + $0x238] sm:$0xff] }
  0xbb   : > { %1982 = vmatpush1.msk.msra.mxu0 %vm614_vm8, %v608_v49  ;;  %v1010_v49 = vld [vmem:[%s4095_s8 + $0x270] sm:$0xff] }
  0xbc   : > { %1983 = vmatmul.mubr.msk.f32.vlgmr.msra.gmra.mrb[0].mxu0 %vm610_vm9, %v599_v50  ;;  %2180 = vmatprep.subr.bf16.mxu0 %v2179_v12  ;;  %v2197_v50 = vpack.c.bf16 %v995_v47, %v988_v46  ;;  %v1037_v12 = vld [vmem:[%s4095_s8 + $0x348] sm:$0xff]  ;;  %v1108_v47 = vld [vmem:[%s4095_s8 + $0x580] sm:$0xff] }
  0xbd   : > { %v696_v51 = vpop.permute.xlu0 %695  ;;  %v704_v55 = vpop.permute.xlu1 %703  ;;  %2182 = vmatpush1.bf16.msra.mxu0 %v2181_v18  ;;  %v2209_v18 = vpack.c.bf16 %v1037_v12, %v1030_v9  ;;  %v1101_v46 = vld [vmem:[%s4095_s8 + $0x548] sm:$0xff] }
  0xbe   : > { %2184 = vmatprep.subr.bf16.mxu0 %v2183_v21  ;;  %v1051_v21 = vld [vmem:[%s4095_s8 + $0x3b8] sm:$0xff] }
  0xc1   : > { %2186 = vmatpush1.bf16.msra.mxu0 %v2185_v26  ;;  %v2213_v26 = vpack.c.bf16 %v1051_v21, %v1044_v20 }
  0xc2   : > { %2188 = vmatprep.subr.bf16.mxu0 %v2187_v10  ;;  %v1065_v10 = vld [vmem:[%s4095_s8 + $0x428] sm:$0xff] }
  0xc5   : > { %2190 = vmatpush1.bf16.msra.mxu0 %v2189_v36  ;;  %v2217_v36 = vpack.c.bf16 %v1065_v10, %v1058_v30 }
  0xc6   : > { %2192 = vmatprep.subr.bf16.mxu0 %v2191_v39  ;;  %v1079_v39 = vld [vmem:[%s4095_s8 + $0x498] sm:$0xff] }
  0xc7   : > { %v2221_v42 = vpack.c.bf16 %v1079_v39, %v1072_v38 }
  0xc9   : > { %2194 = vmatpush1.bf16.msra.mxu0 %v2193_v44  ;;  %v1086_v44 = vld [vmem:[%s4095_s8 + $0x4d0] sm:$0xff] }
  0xca   : > { %2196 = vmatprep.subr.bf16.mxu0 %v2195_v45  ;;  %v1093_v45 = vld [vmem:[%s4095_s8 + $0x508] sm:$0xff] }
  0xcd   : > { %2198 = vmatpush1.bf16.msra.mxu0 %v2197_v50  ;;  %v1100_v50 = vld [vmem:[%s4095_s8 + $0x540] sm:$0xff] }
 0x18f   : > { %v687_v52 = vpop.f32.mrb[0].mxu0 }
 0x190   : > { %v698_v56 = vmul.f32 %v696_v51, %v687_v52  ;;  %v689_v57 = vpop.f32.mrb[1].mxu0  ;;  %v1002_v52 = vld [vmem:[%s4095_s8 + $0x230] sm:$0xff] }
 0x191   : > { %v699_v58 = vmul.f32 %v696_v51, %v689_v57  ;;  %v2199_v51 = vpack.c.bf16 %v1010_v49, %v1003_v48  ;;  %v1024_v57 = vld [vmem:[%s4095_s8 + $0x2e0] sm:$0xff]  ;;  %v2225_v48 = vpack.c.bf16 %v1093_v45, %v1086_v44  ;;  %v2227_v49 = vpack.c.bf16 %v1108_v47, %v1101_v46 }
 0x192   : > { %v706_v60 = vadd.f32 %v704_v55, %v698_v56  ;;  %v1017_v56 = vld [vmem:[%s4095_s8 + $0x2a8] sm:$0xff] }
 0x193   : > { %v707_v61 = vadd.f32 %v704_v55, %v699_v58  ;;  %v1009_v55 = vld [vmem:[%s4095_s8 + $0x268] sm:$0xff]  ;;  %2200 = vmatprep.subr.bf16.mxu0 %v2199_v51  ;;  %v1107_v51 = vld [vmem:[%s4095_s8 + $0x578] sm:$0xff] }
 0x194   : > { %v2904_v63 = vmax.f32 %v706_v60, 0.0  ;;  %v2201_v58 = vpack.c.bf16 %v1009_v55, %v1002_v52  ;;  %v2203_v60 = vpack.c.bf16 %v1024_v57, %v1017_v56  ;;  %v1115_v52 = vld [vmem:[%s4095_s8 + $0x5b8] sm:$0xff]  ;;  %v1122_v55 = vld [vmem:[%s4095_s8 + $0x5f0] sm:$0xff]  ;;  %v2229_v56 = vpack.c.bf16 %v1107_v51, %v1100_v50 }
 0x195   : > { %v2906_v0 = vmax.f32 %v707_v61, 0.0  ;;  %v1016_v61 = vld [vmem:[%s4095_s8 + $0x2a0] sm:$0xff]  ;;  %v2231_v57 = vpack.c.bf16 %v1122_v55, %v1115_v52 }
 0x196   : > { %710 = vrot.lane.b32.xlu1 %v2904_v63, %s2621_s28  ;;  %2202 = vmatpush1.bf16.msra.mxu0 %v2201_v58  ;;  %v1114_v58 = vld [vmem:[%s4095_s8 + $0x5b0] sm:$0xff] }
 0x197   : > { %712 = vrot.lane.b32.xlu0 %v2906_v0, %s2621_s28  ;;  %s4120_s28 = smov 113   ;;  %2204 = vmatprep.subr.bf16.mxu0 %v2203_v60  ;;  %v1121_v60 = vld [vmem:[%s4095_s8 + $0x5e8] sm:$0xff] }
 0x19a   : > { %720 = vrot.lane.b32.xlu1 %v2904_v63, %s2620_s26 }
 0x19b   : > { %722 = vrot.lane.b32.xlu0 %v2906_v0, %s2620_s26  ;;  %s4121_s26 = smov 112  }
 0x19e   : > { %730 = vrot.lane.b32.xlu1 %v2904_v63, %s2622_s29 }
 0x19f   : > { %732 = vrot.lane.b32.xlu0 %v2906_v0, %s2622_s29  ;;  %s4122_s29 = smov 111  }
 0x1a2   : > { %740 = vrot.lane.b32.xlu1 %v2904_v63, %s4118_s16 }
 0x1a3   : > { %742 = vrot.lane.b32.xlu0 %v2906_v0, %s4118_s16  ;;  %s4045_s16 = scalar_lea.hbm %s4099_s12, %s1988_s18 }
 0x1a6   : > { %752 = vrot.lane.b32.xlu1 %v2904_v63, %s4119_s17 }
 0x1a7   : > { %754 = vrot.lane.b32.xlu0 %v2906_v0, %s4119_s17  ;;  %s1906_s17 = scalar_lea.sflag [#allocation5], %s404_s0 }
 0x1aa   : > { %762 = vrot.lane.b32.xlu1 %v2904_v63, %s4120_s28 }
 0x1ab   : > { %764 = vrot.lane.b32.xlu0 %v2906_v0, %s4120_s28  ;;  %s2555_s28 = scalar_lea.vmem %s4047_s15, 16 }
 0x1ac   : > { %p2556_p11 = scmp.ne.s32.totalorder %s4047_s15, %s2555_s28 }
 0x1ae   : > { %772 = vrot.lane.b32.xlu1 %v2904_v63, %s4121_s26  ;;  %p2557_p12 = pnand %p2556_p11, %p2733_p5 }
 0x1af   : > { %774 = vrot.lane.b32.xlu0 %v2906_v0, %s4121_s26  ;;  %s2559_s26 = sshll.u32 %s2629_s25, 4  ;;  %s2560_s26 = int_to_ptr.vmem [resolvable:$false] %s2559_s26 }
 0x1b0   : > { %p2558_p13 = pneg %p2557_p12  ;;  %p2562_p0 = scmp.lt.s32.totalorder %s4047_s15, %s2560_s26 }
 0x1b2   : > { %782 = vrot.lane.b32.xlu1 %v2904_v63, %s4122_s29 }
 0x1b3   : > { %784 = vrot.lane.b32.xlu0 %v2906_v0, %s4122_s29  ;;  %s2561_s29 = scalar_lea.vmem %s2560_s26, 32 }
 0x1b4   : > { %p2563_p1 = scmp.lt.s32.totalorder %s2561_s29, %s2555_s28 }
 0x1b6   : > { %900 = vperm.xlu1 %2553, %v896_v1   ;;  %v1023_v1 = vld [vmem:[%s4095_s8 + $0x2d8] sm:$0xff]  ;;  %p2564_p2 = por %p2563_p1, %p2562_p0 }
 0x1b7   : > { %916 = vperm.xlu0 %2552, %v912_v3   ;;  %v1031_v3 = vld [vmem:[%s4095_s8 + $0x318] sm:$0xff] }
 0x1b8   : > { %p2565_p3 = pnand %p2564_p2, %p2558_p13 }
 0x1ba   : > { %905 = vperm.xlu1 %2553, %v897_v4   ;;  %v1038_v4 = vld [vmem:[%s4095_s8 + $0x350] sm:$0xff] }
 0x1bb   : > { %921 = vperm.xlu0 %2552, %v913_v5   ;;  %v2205_v5 = vpack.c.bf16 %v1023_v1, %v1016_v61  ;;  %v2207_v6 = vpack.c.bf16 %v1038_v4, %v1031_v3  ;;  %v2233_v61 = vpack.c.bf16 %v1121_v60, %v1114_v58  ;;  %v935_v58 = vld [vmem:[%s4095_s8 + $0x18] sm:$0xff]  ;;  %v941_v60 = vld [vmem:[%s4095_s8 + $0x48] sm:$0xff] }
 0x1bd   : > { %2206 = vmatpush1.bf16.msra.mxu0 %v2205_v5 }
 0x1be   : > { %2208 = vmatprep.subr.bf16.mxu0 %v2207_v6 }
 0x1c1   : > { %2210 = vmatpush1.bf16.msra.mxu0 %v2209_v18 }
 0x1c2   : > { %2212 = vmatprep.subr.bf16.mxu0 %v2211_v19 }
 0x1c5   : > { %2214 = vmatpush1.bf16.msra.mxu0 %v2213_v26 }
 0x1c6   : > { %2216 = vmatprep.subr.bf16.mxu0 %v2215_v29 }
 0x1c9   : > { %2218 = vmatpush1.bf16.msra.mxu0 %v2217_v36 }
 0x1ca   : > { %2220 = vmatprep.subr.bf16.mxu0 %v2219_v37 }
 0x1cd   : > { %2222 = vmatpush1.bf16.msra.mxu0 %v2221_v42 }
 0x1ce   : > { %2224 = vmatprep.subr.bf16.mxu0 %v2223_v43 }
 0x1d1   : > { %2226 = vmatpush1.bf16.msra.mxu0 %v2225_v48 }
 0x1d2   : > { %2228 = vmatprep.subr.bf16.mxu0 %v2227_v49 }
 0x1d5   : > { %2230 = vmatpush1.bf16.msra.mxu0 %v2229_v56 }
 0x1d6   : > { %2232 = vmatprep.subr.bf16.mxu0 %v2231_v57 }
 0x1d9   : > { %2234 = vmatpush1.bf16.msra.mxu0 %v2233_v61  ;;  %v949_v61 = vld [vmem:[%s4095_s8 + $0x88] sm:$0xff] }
 0x208   : > { %v711_v1 = vpop.permute.xlu1 %710 }
 0x209   : > { %v713_v3 = vpop.permute.xlu0 %712 }
 0x20a   : > { %v714_v4 = vsel %vm425_vm1, %v711_v1, %v713_v3  ;;  %v715_v5 = vsel %vm425_vm1, %v713_v3, %v711_v1  ;;  %v792_v3 = vld [vmem:[%s4092_s5] sm:$0xff] }
 0x20b   : > { %v716_v17 = vmul.f32 %v715_v5, %v2804_v23  ;;  %v717_v19 = vmul.f32 %v714_v4, %v2807_v24  ;;  %v2247_v5 = vpack.c.bf16 %v956_v8, %v949_v61  ;;  %v1089_v61 = vld [vmem:[%s4095_s8 + $0x4e8] sm:$0xff]  ;;  %v1096_v8 = vld [vmem:[%s4095_s8 + $0x520] sm:$0xff] }
 0x20c   : > { %v721_v6 = vpop.permute.xlu1 %720 }
 0x20d   : > { %v723_v9 = vpop.permute.xlu0 %722 }
 0x20e   : > { %v724_v12 = vsel %vm444_vm2, %v721_v6, %v723_v9  ;;  %v725_v14 = vsel %vm444_vm2, %v723_v9, %v721_v6  ;;  %v948_v6 = vld [vmem:[%s4095_s8 + $0x80] sm:$0xff]  ;;  %v955_v9 = vld [vmem:[%s4095_s8 + $0xb8] sm:$0xff] }
 0x20f   : > { %v726_v18 = vmul.f32 %v725_v14, %v2812_v27  ;;  %v727_v20 = vmul.f32 %v724_v12, %v2815_v28  ;;  %v970_v12 = vld [vmem:[%s4095_s8 + $0x130] sm:$0xff]  ;;  %v793_v14 = vld [vmem:[%s4092_s5 + $0x8] sm:$0xff] }
 0x210   : > { %v731_v21 = vpop.permute.xlu1 %730 }
 0x211   : > { %v733_v22 = vpop.permute.xlu0 %732  ;;  %v2163_v25 = vpack.c.bf16 %v727_v20, %v717_v19  ;;  %v2165_v26 = vpack.c.bf16 %v726_v18, %v716_v17  ;;  %v2249_v17 = vpack.c.bf16 %v955_v9, %v948_v6  ;;  %v962_v19 = vld [vmem:[%s4095_s8 + $0xf0] sm:$0xff]  ;;  %v969_v20 = vld [vmem:[%s4095_s8 + $0x128] sm:$0xff] }
 0x212   : > { %v734_v29 = vsel %vm469_vm3, %v731_v21, %v733_v22  ;;  %v735_v30 = vsel %vm469_vm3, %v733_v22, %v731_v21  ;;  %v984_v21 = vld [vmem:[%s4095_s8 + $0x1a0] sm:$0xff]  ;;  %v2253_v22 = vpack.c.bf16 %v969_v20, %v962_v19  ;;  %v1110_v6 = vld [vmem:[%s4095_s8 + $0x590] sm:$0xff] }
 0x213   : > { %2164 = vmatprep.subr.bf16.mxu1 %v2163_v25  ;;  %v736_v28 = vmul.f32 %v735_v30, %v2820_v34  ;;  %v737_v11 = vmul.f32 %v734_v29, %v2823_v35  ;;  %v983_v29 = vld [vmem:[%s4095_s8 + $0x198] sm:$0xff] }
 0x214   : > { %v741_v10 = vpop.permute.xlu1 %740  ;;  %2166 = vmatpush1.bf16.msra.mxu1 %v2165_v26  ;;  %v976_v26 = vld [vmem:[%s4095_s8 + $0x160] sm:$0xff]  ;;  %v991_v30 = vld [vmem:[%s4095_s8 + $0x1d8] sm:$0xff] }
 0x215   : > { %v743_v23 = vpop.permute.xlu0 %742 }
 0x216   : > { %v744_v27 = vsel %vm488_vm0, %v741_v10, %v743_v23  ;;  %v745_v24 = vsel %vm488_vm0, %v743_v23, %v741_v10  ;;  %v998_v10 = vld [vmem:[%s4095_s8 + $0x210] sm:$0xff]  ;;  %v2257_v23 = vpack.c.bf16 %v983_v29, %v976_v26  ;;  %v1136_v26 = vld [vmem:[%s4095_s8 + $0x660] sm:$0xff]  ;;  %v1131_v29 = vld [vmem:[%s4095_s8 + $0x638] sm:$0xff] }
 0x217   : > { %v746_v31 = vmul.f32 %v745_v24, %v2790_v15  ;;  %v747_v36 = vmul.f32 %v744_v27, %v2793_v16  ;;  %v2259_v27 = vpack.c.bf16 %v998_v10, %v991_v30  ;;  %v990_v24 = vld [vmem:[%s4095_s8 + $0x1d0] sm:$0xff] }
 0x218   : > { %v753_v37 = vpop.permute.xlu1 %752  ;;  %v1138_v10 = vld [vmem:[%s4095_s8 + $0x670] sm:$0xff] }
 0x219   : > { %v755_v38 = vpop.permute.xlu0 %754  ;;  %v2167_v39 = vpack.c.bf16 %v747_v36, %v737_v11  ;;  %v2169_v40 = vpack.c.bf16 %v746_v31, %v736_v28  ;;  %v997_v28 = vld [vmem:[%s4095_s8 + $0x208] sm:$0xff]  ;;  %v1012_v31 = vld [vmem:[%s4095_s8 + $0x280] sm:$0xff] }
 0x21a   : > { %v756_v41 = vsel %vm515_vm4, %v753_v37, %v755_v38  ;;  %v757_v42 = vsel %vm515_vm4, %v755_v38, %v753_v37  ;;  %v1005_v11 = vld [vmem:[%s4095_s8 + $0x248] sm:$0xff]  ;;  %v2261_v36 = vpack.c.bf16 %v997_v28, %v990_v24  ;;  %v1004_v38 = vld [vmem:[%s4095_s8 + $0x240] sm:$0xff]  ;;  %v2299_v24 = vpack.c.bf16 %v1138_v10, %v1131_v29  ;;  %v1078_v29 = vld [vmem:[%s4095_s8 + $0x490] sm:$0xff] }
 0x21b   : > { %v758_v43 = vmul.f32 %v756_v41, %v2846_v53  ;;  %v759_v34 = vmul.f32 %v757_v42, %v2849_v54  ;;  %2168 = vmatprep.subr.bf16.mxu1 %v2167_v39  ;;  %v2263_v37 = vpack.c.bf16 %v1012_v31, %v1005_v11  ;;  %v1011_v39 = vld [vmem:[%s4095_s8 + $0x278] sm:$0xff]  ;;  %v1026_v41 = vld [vmem:[%s4095_s8 + $0x2f0] sm:$0xff]  ;;  %v1137_v31 = vld [vmem:[%s4095_s8 + $0x668] sm:$0xff] }
 0x21c   : > { %v763_v35 = vpop.permute.xlu1 %762  ;;  %2170 = vmatpush1.bf16.msra.mxu1 %v2169_v40  ;;  %v1019_v40 = vld [vmem:[%s4095_s8 + $0x2b8] sm:$0xff]  ;;  %v2265_v42 = vpack.c.bf16 %v1011_v39, %v1004_v38  ;;  %v1130_v11 = vld [vmem:[%s4095_s8 + $0x630] sm:$0xff]  ;;  %v1145_v39 = vld [vmem:[%s4095_s8 + $0x6a8] sm:$0xff] }
 0x21d   : > { %v765_v15 = vpop.permute.xlu0 %764  ;;  %v2171_v16 = vpack.c.bf16 %v759_v34, %v2906_v0  ;;  %v2173_v44 = vpack.c.bf16 %v758_v43, %v2904_v63  ;;  %v2267_v43 = vpack.c.bf16 %v1026_v41, %v1019_v40  ;;  %v1018_v34 = vld [vmem:[%s4095_s8 + $0x2b0] sm:$0xff]  ;;  %v1152_v41 = vld [vmem:[%s4095_s8 + $0x6e0] sm:$0xff] }
 0x21e   : > { %v766_v45 = vsel %vm540_vm6, %v763_v35, %v765_v15  ;;  %v767_v46 = vsel %vm540_vm6, %v765_v15, %v763_v35  ;;  %v1025_v35 = vld [vmem:[%s4095_s8 + $0x2e8] sm:$0xff]  ;;  %v1150_v38 = vld [vmem:[%s4095_s8 + $0x6d0] sm:$0xff] }
 0x21f   : > { %2172 = vmatprep.subr.bf16.mxu1 %v2171_v16  ;;  %v768_v0 = vmul.f32 %v766_v45, %v2873_v7  ;;  %v769_v63 = vmul.f32 %v767_v46, %v2876_v13  ;;  %v942_v7 = vld [vmem:[%s4095_s8 + $0x50] sm:$0xff]  ;;  %v1033_v15 = vld [vmem:[%s4095_s8 + $0x328] sm:$0xff]  ;;  %v1040_v16 = vld [vmem:[%s4095_s8 + $0x360] sm:$0xff] }
 0x220   : > { %v773_v47 = vpop.permute.xlu1 %772  ;;  %2174 = vmatpush1.bf16.msra.mxu1 %v2173_v44  ;;  %v934_v13 = vld [vmem:[%s4095_s8 + $0x10] sm:$0xff]  ;;  %v2269_v44 = vpack.c.bf16 %v1025_v35, %v1018_v34  ;;  %v2271_v45 = vpack.c.bf16 %v1040_v16, %v1033_v15  ;;  %v1032_v46 = vld [vmem:[%s4095_s8 + $0x320] sm:$0xff]  ;;  %v2303_v34 = vpack.c.bf16 %v1152_v41, %v1145_v39  ;;  %v1151_v16 = vld [vmem:[%s4095_s8 + $0x6d8] sm:$0xff] }
 0x221   : > { %v775_v53 = vpop.permute.xlu0 %774  ;;  %v2245_v4 = vpack.c.bf16 %v941_v60, %v934_v13  ;;  %v1074_v13 = vld [vmem:[%s4095_s8 + $0x470] sm:$0xff]  ;;  %v1081_v60 = vld [vmem:[%s4095_s8 + $0x4a8] sm:$0xff]  ;;  %v1144_v15 = vld [vmem:[%s4095_s8 + $0x6a0] sm:$0xff] }
 0x222   : > { %v776_v54 = vsel %vm559_vm5, %v773_v47, %v775_v53  ;;  %v777_v48 = vsel %vm559_vm5, %v775_v53, %v773_v47  ;;  %v1039_v47 = vld [vmem:[%s4095_s8 + $0x358] sm:$0xff]  ;;  %v1092_v41 = vld [vmem:[%s4095_s8 + $0x500] sm:$0xff] }
 0x223   : > { %v778_v49 = vmul.f32 %v776_v54, %v2857_v59  ;;  %v779_v50 = vmul.f32 %v777_v48, %v2862_v62  ;;  %v1047_v53 = vld [vmem:[%s4095_s8 + $0x398] sm:$0xff]  ;;  %v1054_v54 = vld [vmem:[%s4095_s8 + $0x3d0] sm:$0xff]  ;;  %v2273_v48 = vpack.c.bf16 %v1039_v47, %v1032_v46  ;;  %v944_v46 = vld [vmem:[%s4095_s8 + $0x60] sm:$0xff] }
 0x224   : > { %v783_v51 = vpop.permute.xlu1 %782  ;;  %v1050_v47 = vld [vmem:[%s4095_s8 + $0x3b0] sm:$0xff] }
 0x225   : > { %v785_v52 = vpop.permute.xlu0 %784  ;;  %v2175_v55 = vpack.c.bf16 %v779_v50, %v769_v63  ;;  %v2177_v56 = vpack.c.bf16 %v778_v49, %v768_v0  ;;  %v2275_v0 = vpack.c.bf16 %v1054_v54, %v1047_v53  ;;  %v1046_v63 = vld [vmem:[%s4095_s8 + $0x390] sm:$0xff]  ;;  %v1053_v49 = vld [vmem:[%s4095_s8 + $0x3c8] sm:$0xff] }
 0x226   : > { %v787_v57 = vsel %vm584_vm7, %v785_v52, %v783_v51  ;;  %v786_v59 = vsel %vm584_vm7, %v783_v51, %v785_v52  ;;  %v1061_v50 = vld [vmem:[%s4095_s8 + $0x408] sm:$0xff]  ;;  %v1068_v51 = vld [vmem:[%s4095_s8 + $0x440] sm:$0xff]  ;;  %v2277_v52 = vpack.c.bf16 %v1053_v49, %v1046_v63 }
 0x227   : > { %v789_v62 = vmul.f32 %v2893_v33, %v787_v57  ;;  %2176 = vmatprep.subr.bf16.mxu1 %v2175_v55  ;;  %v2243_v33 = vpack.c.bf16 %v942_v7, %v935_v58  ;;  %v788_v1 = vmul.f32 %v2888_v32, %v786_v59  ;;  %v963_v32 = vld [vmem:[%s4095_s8 + $0xf8] sm:$0xff]  ;;  %v2279_v55 = vpack.c.bf16 %v1068_v51, %v1061_v50  ;;  %v1082_v7 = vld [vmem:[%s4095_s8 + $0x4b0] sm:$0xff]  ;;  %v1057_v54 = vld [vmem:[%s4095_s8 + $0x3e8] sm:$0xff] }
 0x228   : > { %2178 = vmatpush1.bf16.msra.mxu1 %v2177_v56  ;;  %v2251_v18 = vpack.c.bf16 %v970_v12, %v963_v32  ;;  %v1060_v56 = vld [vmem:[%s4095_s8 + $0x400] sm:$0xff]  ;;  %v1067_v57 = vld [vmem:[%s4095_s8 + $0x438] sm:$0xff]  ;;  %v1102_v12 = vld [vmem:[%s4095_s8 + $0x550] sm:$0xff] }
 0x229   : > { %835 = vmatprep.subr.mxu1 %v789_v62  ;;  %v1075_v58 = vld [vmem:[%s4095_s8 + $0x478] sm:$0xff]  ;;  %v2281_v59 = vpack.c.bf16 %v1067_v57, %v1060_v56 }
 0x22a   : > { %v2283_v62 = vpack.c.bf16 %v1082_v7, %v1075_v58  ;;  %v943_v56 = vld [vmem:[%s4095_s8 + $0x58] sm:$0xff]  ;;  %v938_v58 = vld [vmem:[%s4095_s8 + $0x30] sm:$0xff]  ;;  %v945_v7 = vld [vmem:[%s4095_s8 + $0x68] sm:$0xff] }
 0x22c   : > { %836 = vmatpush1.msra.mxu1 %v788_v1  ;;  %v2287_v1 = vpack.c.bf16 %v1096_v8, %v1089_v61  ;;  %v958_v61 = vld [vmem:[%s4095_s8 + $0xd0] sm:$0xff]  ;;  %v1064_v8 = vld [vmem:[%s4095_s8 + $0x420] sm:$0xff] }
 0x22d   : > { %1984 = vmatmul.mubr.msk.f32.vlgmr.msra.gmra.mrb[0].mxu1 %vm812_vm10, %v792_v3  ;;  %2244 = vmatprep.subr.bf16.mxu1 %v2243_v33  ;;  %v2285_v33 = vpack.c.bf16 %v1081_v60, %v1074_v13  ;;  %v1088_v3 = vld [vmem:[%s4095_s8 + $0x4e0] sm:$0xff] }
 0x22e   : > { %889 = vmatprep.mubr.f32.mxu1 %v2627_v2  ;;  %2246 = vmatpush1.bf16.msra.mxu1 %v2245_v4  ;;  %v977_v2 = vld [vmem:[%s4095_s8 + $0x168] sm:$0xff]  ;;  %v1095_v4 = vld [vmem:[%s4095_s8 + $0x518] sm:$0xff] }
 0x22f   : > { %2248 = vmatprep.subr.bf16.mxu1 %v2247_v5  ;;  %v2255_v25 = vpack.c.bf16 %v984_v21, %v977_v2  ;;  %v1103_v5 = vld [vmem:[%s4095_s8 + $0x558] sm:$0xff]  ;;  %v2289_v9 = vpack.c.bf16 %v1095_v4, %v1088_v3  ;;  %v1116_v2 = vld [vmem:[%s4095_s8 + $0x5c0] sm:$0xff] }
 0x230   : > { %v2291_v32 = vpack.c.bf16 %v1110_v6, %v1103_v5  ;;  %v1123_v21 = vld [vmem:[%s4095_s8 + $0x5f8] sm:$0xff] }
 0x231   : > { %1985 = vmatmul.mubr.msk.f32.gmra.mrb[2].mxu1 %vm812_vm10, %v793_v14  ;;  %v1109_v14 = vld [vmem:[%s4095_s8 + $0x588] sm:$0xff] }
 0x232   : > { %2250 = vmatpush1.bf16.msra.mxu1 %v2249_v17  ;;  %v1117_v17 = vld [vmem:[%s4095_s8 + $0x5c8] sm:$0xff]  ;;  %v2293_v19 = vpack.c.bf16 %v1109_v14, %v1102_v12  ;;  %v950_v12 = vld [vmem:[%s4095_s8 + $0x90] sm:$0xff] }
 0x233   : > { %2252 = vmatprep.subr.bf16.mxu1 %v2251_v18  ;;  %v1124_v18 = vld [vmem:[%s4095_s8 + $0x600] sm:$0xff] }
 0x234   : > { %v2295_v20 = vpack.c.bf16 %v1124_v18, %v1117_v17 }
 0x236   : > { %2254 = vmatpush1.bf16.msra.mxu1 %v2253_v22  ;;  %v2297_v22 = vpack.c.bf16 %v1123_v21, %v1116_v2  ;;  %v917_v63 = vpop.permute.xlu0 %916  ;;  %v952_v2 = vld [vmem:[%s4095_s8 + $0xa0] sm:$0xff]  ;;  %v959_v21 = vld [vmem:[%s4095_s8 + $0xd8] sm:$0xff] }
 0x237   : > { %2256 = vmatprep.subr.bf16.mxu1 %v2255_v25  ;;  %v1129_v25 = vld [vmem:[%s4095_s8 + $0x628] sm:$0xff] }
 0x238   : > { %v2235_v30 = vpack.c.bf16 %v1136_v26, %v1129_v25  ;;  %v965_v25 = vld [vmem:[%s4095_s8 + $0x108] sm:$0xff]  ;;  %v972_v26 = vld [vmem:[%s4095_s8 + $0x140] sm:$0xff] }
 0x23a   : > { %2258 = vmatpush1.bf16.msra.mxu1 %v2257_v23  ;;  %v1128_v23 = vld [vmem:[%s4095_s8 + $0x620] sm:$0xff]  ;;  %2236 = vmatprep.subr.bf16.mxu0 %v2235_v30  ;;  %v922_v4 = vpop.permute.xlu0 %921  ;;  %v1085_v30 = vld [vmem:[%s4095_s8 + $0x4c8] sm:$0xff] }
 0x23b   : > { %2260 = vmatprep.subr.bf16.mxu1 %v2259_v27  ;;  %v1135_v27 = vld [vmem:[%s4095_s8 + $0x658] sm:$0xff]  ;;  %v2379_v39 = vpack.c.bf16 %v1085_v30, %v1078_v29 }
 0x23c   : > { %v2237_v28 = vpack.c.bf16 %v1135_v27, %v1128_v23  ;;  %v2377_v27 = vpack.c.bf16 %v959_v21, %v952_v2  ;;  %v1022_v2 = vld [vmem:[%s4095_s8 + $0x2d0] sm:$0xff]  ;;  %v1029_v21 = vld [vmem:[%s4095_s8 + $0x308] sm:$0xff]  ;;  %v1155_v29 = vld [vmem:[%s4095_s8 + $0x6f8] sm:$0xff] }
 0x23e   : > { %2262 = vmatpush1.bf16.msra.mxu1 %v2261_v36  ;;  %v2301_v36 = vpack.c.bf16 %v1137_v31, %v1130_v11  ;;  %2238 = vmatpush1.bf16.msra.mxu0 %v2237_v28  ;;  %v971_v28 = vld [vmem:[%s4095_s8 + $0x138] sm:$0xff]  ;;  %v966_v31 = vld [vmem:[%s4095_s8 + $0x110] sm:$0xff] }
 0x23f   : > { %2264 = vmatprep.subr.bf16.mxu1 %v2263_v37  ;;  %v1143_v37 = vld [vmem:[%s4095_s8 + $0x698] sm:$0xff] }
 0x240   : > { %v2239_v40 = vpack.c.bf16 %v1150_v38, %v1143_v37  ;;  %v979_v37 = vld [vmem:[%s4095_s8 + $0x178] sm:$0xff]  ;;  %v2315_v38 = vpack.c.bf16 %v972_v26, %v965_v25  ;;  %v1042_v25 = vld [vmem:[%s4095_s8 + $0x370] sm:$0xff]  ;;  %v1148_v26 = vld [vmem:[%s4095_s8 + $0x6c0] sm:$0xff] }
 0x242   : > { %2266 = vmatpush1.bf16.msra.mxu1 %v2265_v42  ;;  %v1142_v42 = vld [vmem:[%s4095_s8 + $0x690] sm:$0xff]  ;;  %2240 = vmatprep.subr.bf16.mxu0 %v2239_v40 }
 0x243   : > { %2268 = vmatprep.subr.bf16.mxu1 %v2267_v43  ;;  %v1149_v43 = vld [vmem:[%s4095_s8 + $0x6c8] sm:$0xff]  ;;  %v986_v40 = vld [vmem:[%s4095_s8 + $0x1b0] sm:$0xff] }
 0x244   : > { %v2241_v35 = vpack.c.bf16 %v1149_v43, %v1142_v42  ;;  %v1099_v42 = vld [vmem:[%s4095_s8 + $0x538] sm:$0xff] }
 0x246   : > { %2270 = vmatpush1.bf16.msra.mxu1 %v2269_v44  ;;  %v2305_v44 = vpack.c.bf16 %v1151_v16, %v1144_v15  ;;  %2242 = vmatpush1.bf16.msra.mxu0 %v2241_v35  ;;  %v978_v35 = vld [vmem:[%s4095_s8 + $0x170] sm:$0xff]  ;;  %v985_v15 = vld [vmem:[%s4095_s8 + $0x1a8] sm:$0xff]  ;;  %v2319_v16 = vpack.c.bf16 %v986_v40, %v979_v37  ;;  %v1043_v37 = vld [vmem:[%s4095_s8 + $0x378] sm:$0xff] }
 0x247   : > { %2272 = vmatprep.subr.bf16.mxu1 %v2271_v45  ;;  %v937_v45 = vld [vmem:[%s4095_s8 + $0x28] sm:$0xff]  ;;  %v1506_v40 = vld [vmem:[%s4097_s10 + $0x80] sm:$0xff] }
 0x248   : > { %v2307_v53 = vpack.c.bf16 %v944_v46, %v937_v45  ;;  %v980_v45 = vld [vmem:[%s4095_s8 + $0x180] sm:$0xff]  ;;  %v987_v46 = vld [vmem:[%s4095_s8 + $0x1b8] sm:$0xff] }
 0x24a   : > { %2274 = vmatpush1.bf16.msra.mxu1 %v2273_v48  ;;  %v2371_v48 = vpack.c.bf16 %v1057_v54, %v1050_v47  ;;  %2308 = vmatprep.subr.bf16.mxu0 %v2307_v53  ;;  %v993_v47 = vld [vmem:[%s4095_s8 + $0x1e8] sm:$0xff]  ;;  %v1000_v53 = vld [vmem:[%s4095_s8 + $0x220] sm:$0xff]  ;;  %v1106_v54 = vld [vmem:[%s4095_s8 + $0x570] sm:$0xff] }
 0x24b   : > { %2276 = vmatprep.subr.bf16.mxu1 %v2275_v0  ;;  %v901_v0 = vpop.permute.xlu1 %900 }
 0x24e   : > { %2278 = vmatpush1.bf16.msra.mxu1 %v2277_v52 }
 0x24f   : > { %2280 = vmatprep.subr.bf16.mxu1 %v2279_v55  ;;  %v936_v55 = vld [vmem:[%s4095_s8 + $0x20] sm:$0xff] }
 0x252   : > { %2282 = vmatpush1.bf16.msra.mxu1 %v2281_v59  ;;  %v951_v59 = vld [vmem:[%s4095_s8 + $0x98] sm:$0xff] }
 0x253   : > { %2284 = vmatprep.subr.bf16.mxu1 %v2283_v62  ;;  %v906_v62 = vpop.permute.xlu1 %905  ;;  %v2311_v18 = vpack.c.bf16 %v958_v61, %v951_v59  ;;  %v1127_v59 = vld [vmem:[%s4095_s8 + $0x618] sm:$0xff]  ;;  %v1013_v61 = vld [vmem:[%s4095_s8 + $0x288] sm:$0xff] }
 0x256   : > { %2286 = vmatpush1.bf16.msra.mxu1 %v2285_v33  ;;  %v1071_v33 = vld [vmem:[%s4095_s8 + $0x458] sm:$0xff] }
 0x257   : > { %2288 = vmatprep.subr.bf16.mxu1 %v2287_v1 }
 0x25a   : > { %2290 = vmatpush1.bf16.msra.mxu1 %v2289_v9  ;;  %v2309_v9 = vpack.c.bf16 %v943_v56, %v936_v55  ;;  %v994_v55 = vld [vmem:[%s4095_s8 + $0x1f0] sm:$0xff]  ;;  %v1001_v56 = vld [vmem:[%s4095_s8 + $0x228] sm:$0xff] }
 0x25b   : > { %2292 = vmatprep.subr.bf16.mxu1 %v2291_v32  ;;  %v2373_v32 = vpack.c.bf16 %v945_v7, %v938_v58  ;;  %v1014_v58 = vld [vmem:[%s4095_s8 + $0x290] sm:$0xff]  ;;  %v1120_v7 = vld [vmem:[%s4095_s8 + $0x5e0] sm:$0xff] }
 0x25e   : > { %2294 = vmatpush1.bf16.msra.mxu1 %v2293_v19  ;;  %v2375_v19 = vpack.c.bf16 %v1071_v33, %v1064_v8  ;;  %v2391_v33 = vpack.c.bf16 %v1127_v59, %v1120_v7  ;;  %v1511_v7 = vld [vmem:[%s4097_s10 + $0xa8] sm:$0xff] }
 0x25f   : > { %2296 = vmatprep.subr.bf16.mxu1 %v2295_v20  ;;  %v957_v20 = vld [vmem:[%s4095_s8 + $0xc8] sm:$0xff] }
 0x260   : > { %v2313_v23 = vpack.c.bf16 %v957_v20, %v950_v12 }
 0x262   : > { %2298 = vmatpush1.bf16.msra.mxu1 %v2297_v22 }
 0x263   : > { %2300 = vmatprep.subr.bf16.mxu1 %v2299_v24  ;;  %v964_v24 = vld [vmem:[%s4095_s8 + $0x100] sm:$0xff] }
 0x264   : > { %v2317_v43 = vpack.c.bf16 %v971_v28, %v964_v24  ;;  %v1041_v24 = vld [vmem:[%s4095_s8 + $0x368] sm:$0xff] }
 0x266   : > { %2302 = vmatpush1.bf16.msra.mxu1 %v2301_v36  ;;  %v973_v36 = vld [vmem:[%s4095_s8 + $0x148] sm:$0xff] }
 0x267   : > { %2304 = vmatprep.subr.bf16.mxu1 %v2303_v34  ;;  %v2381_v34 = vpack.c.bf16 %v973_v36, %v966_v31  ;;  %v2399_v31 = vpack.c.bf16 %v1155_v29, %v1148_v26  ;;  %v1036_v36 = vld [vmem:[%s4095_s8 + $0x340] sm:$0xff]  ;;  %v1515_v26 = vld [vmem:[%s4097_s10 + $0xc8] sm:$0xff] }
 0x26a   : > { %2306 = vmatpush1.bf16.msra.mxu1 %v2305_v44  ;;  %v2383_v44 = vpack.c.bf16 %v1099_v42, %v1092_v41  ;;  %v1507_v41 = vld [vmem:[%s4097_s10 + $0x88] sm:$0xff] }
 0x26b   : > { %2372 = vmatprep.subr.bf16.mxu1 %v2371_v48  ;;  %v1113_v48 = vld [vmem:[%s4095_s8 + $0x5a8] sm:$0xff] }
 0x300   : > { %v885_v49 = vpop.f32.mrb[0].mxu1 }
 0x301   : > { %v908_v50 = vmul.f32 %v901_v0, %v885_v49  ;;  %v887_v51 = vpop.f32.mrb[1].mxu1  ;;  %v992_v49 = vld [vmem:[%s4095_s8 + $0x1e0] sm:$0xff] }
 0x302   : > { %v909_v52 = vmul.f32 %v901_v0, %v887_v51  ;;  %v2321_v0 = vpack.c.bf16 %v985_v15, %v978_v35  ;;  %v2323_v51 = vpack.c.bf16 %v1000_v53, %v993_v47  ;;  %v1048_v35 = vld [vmem:[%s4095_s8 + $0x3a0] sm:$0xff]  ;;  %v1055_v15 = vld [vmem:[%s4095_s8 + $0x3d8] sm:$0xff]  ;;  %v1491_v47 = vld [vmem:[%s4097_s10 + $0x8] sm:$0xff] }
 0x303   : > { %v924_v57 = vadd.f32 %v917_v63, %v908_v50  ;;  %v999_v50 = vld [vmem:[%s4095_s8 + $0x218] sm:$0xff]  ;;  %v1508_v53 = vld [vmem:[%s4097_s10 + $0x90] sm:$0xff] }
 0x304   : > { %v925_v13 = vadd.f32 %v917_v63, %v909_v52  ;;  %v891_v60 = vpop.f32.mrb[2].mxu1  ;;  %v2385_v63 = vpack.c.bf16 %v987_v46, %v980_v45  ;;  %v2387_v52 = vpack.c.bf16 %v1113_v48, %v1106_v54  ;;  %v1070_v45 = vld [vmem:[%s4095_s8 + $0x450] sm:$0xff]  ;;  %v1490_v46 = vld [vmem:[%s4097_s10] sm:$0xff]  ;;  %v1509_v54 = vld [vmem:[%s4097_s10 + $0x98] sm:$0xff]  ;;  %v2341_v48 = vpack.c.bf16 %v1055_v15, %v1048_v35 }
 0x305   : > { %v910_v1 = vmul.f32 %v906_v62, %v891_v60  ;;  %v893_v3 = vpop.f32.mrb[3].mxu1  ;;  %v3434_v14 = vmax.f32 %v924_v57, 0.0  ;;  %v1007_v57 = vld [vmem:[%s4095_s8 + $0x258] sm:$0xff]  ;;  %v1006_v60 = vld [vmem:[%s4095_s8 + $0x250] sm:$0xff]  ;;  %v1133_v35 = vld [vmem:[%s4095_s8 + $0x648] sm:$0xff] }
 0x306   : > { %v929_v5 = vmax.f32 %v925_v13, 0.0  ;;  %v911_v6 = vmul.f32 %v906_v62, %v893_v3  ;;  %v2325_v62 = vpack.c.bf16 %v999_v50, %v992_v49  ;;  %v2389_v13 = vpack.c.bf16 %v1001_v56, %v994_v55  ;;  %v1015_v3 = vld [vmem:[%s4095_s8 + $0x298] sm:$0xff]  ;;  %v1069_v49 = vld [vmem:[%s4095_s8 + $0x448] sm:$0xff]  ;;  %v1492_v56 = vld [vmem:[%s4097_s10 + $0x10] sm:$0xff] }
 0x307   : > { %v926_v17 = vadd.f32 %v922_v4, %v910_v1  ;;  %v2327_v8 = vpack.c.bf16 %v1014_v58, %v1007_v57  ;;  %v1008_v1 = vld [vmem:[%s4095_s8 + $0x260] sm:$0xff]  ;;  %v1077_v50 = vld [vmem:[%s4095_s8 + $0x488] sm:$0xff]  ;;  %v2407_v55 = vpack.c.bf16 %v1509_v54, %v1508_v53  ;;  %v1493_v57 = vld [vmem:[%s4097_s10 + $0x18] sm:$0xff] }
 0x308   : > { %v927_v22 = vadd.f32 %v922_v4, %v911_v6  ;;  %1220 = vmatprep.mubr.f32.mxu0 %v929_v5  ;;  %1297 = vmatprep.mubr.f32.mxu1 %v929_v5  ;;  %v1021_v4 = vld [vmem:[%s4095_s8 + $0x2c8] sm:$0xff]  ;;  %v1134_v6 = vld [vmem:[%s4095_s8 + $0x650] sm:$0xff]  ;;  %v2393_v12 = vpack.c.bf16 %v1015_v3, %v1008_v1  ;;  %v1510_v58 = vld [vmem:[%s4097_s10 + $0xa0] sm:$0xff] }
 0x309   : > { %1221 = vmatmul.mubr.f32.vlgmr.msra.gmra.mrb[2].mxu0 %v3434_v14  ;;  %1298 = vmatmul.mubr.f32.vlgmr.msra.gmra.mrb[4].mxu1 %v3434_v14  ;;  %v3467_v11 = vmax.f32 %v926_v17, 0.0  ;;  %v1020_v17 = vld [vmem:[%s4095_s8 + $0x2c0] sm:$0xff]  ;;  %v2411_v1 = vpack.c.bf16 %v1511_v7, %v1510_v58  ;;  %v1519_v53 = vld [vmem:[%s4097_s10 + $0xe8] sm:$0xff]  ;;  %v1146_v7 = vld [vmem:[%s4095_s8 + $0x6b0] sm:$0xff] }
 0x30a   : > { %v3459_v10 = vmax.f32 %v927_v22, 0.0  ;;  %2310 = vmatpush1.bf16.msra.mxu0 %v2309_v9  ;;  %2374 = vmatpush3.bf16.msra.mxu1 %v2373_v32  ;;  %v1141_v9 = vld [vmem:[%s4095_s8 + $0x688] sm:$0xff]  ;;  %v2329_v32 = vpack.c.bf16 %v1013_v61, %v1006_v60  ;;  %v1035_v22 = vld [vmem:[%s4095_s8 + $0x338] sm:$0xff]  ;;  %v1494_v3 = vld [vmem:[%s4097_s10 + $0x20] sm:$0xff] }
 0x30b   : > { %2312 = vmatprep.subr.bf16.mxu0 %v2311_v18  ;;  %2376 = vmatprep.subr.bf16.mxu1 %v2375_v19  ;;  %v1027_v18 = vld [vmem:[%s4095_s8 + $0x2f8] sm:$0xff]  ;;  %v2395_v20 = vpack.c.bf16 %v1141_v9, %v1134_v6  ;;  %v2335_v28 = vpack.c.bf16 %v1042_v25, %v1035_v22  ;;  %v1514_v25 = vld [vmem:[%s4097_s10 + $0xc0] sm:$0xff] }
 0x30c   : > { %1226 = vmatprep.mubr.f32.mxu0 %v3459_v10  ;;  %1303 = vmatprep.mubr.f32.mxu1 %v3459_v10  ;;  %v2333_v30 = vpack.c.bf16 %v1027_v18, %v1020_v17  ;;  %v1083_v60 = vld [vmem:[%s4095_s8 + $0x4b8] sm:$0xff]  ;;  %v1097_v17 = vld [vmem:[%s4095_s8 + $0x528] sm:$0xff] }
 0x30d   : > { %1227 = vmatmul.mubr.f32.gmra.mrb[4].mxu0 %v3467_v11  ;;  %1304 = vmatmul.mubr.f32.gmra.mrb[6].mxu1 %v3467_v11  ;;  %v1091_v61 = vld [vmem:[%s4095_s8 + $0x4f8] sm:$0xff]  ;;  %v1105_v18 = vld [vmem:[%s4095_s8 + $0x568] sm:$0xff] }
 0x30e   : > { %2314 = vmatpush1.bf16.msra.mxu0 %v2313_v23  ;;  %2378 = vmatpush3.bf16.msra.mxu1 %v2377_v27  ;;  %v2397_v23 = vpack.c.bf16 %v1029_v21, %v1022_v2  ;;  %v1034_v27 = vld [vmem:[%s4095_s8 + $0x330] sm:$0xff]  ;;  %v1513_v6 = vld [vmem:[%s4097_s10 + $0xb8] sm:$0xff] }
 0x30f   : > { %1374 = vmatprep.mubr.f32.mxu0 %v929_v5  ;;  %1451 = vmatprep.mubr.f32.mxu1 %v929_v5  ;;  %v1028_v5 = vld [vmem:[%s4095_s8 + $0x300] sm:$0xff]  ;;  %v2337_v42 = vpack.c.bf16 %v1041_v24, %v1034_v27  ;;  %v1496_v21 = vld [vmem:[%s4097_s10 + $0x30] sm:$0xff]  ;;  %v1497_v22 = vld [vmem:[%s4097_s10 + $0x38] sm:$0xff] }
 0x310   : > { %2316 = vmatprep.subr.bf16.mxu0 %v2315_v38  ;;  %2380 = vmatprep.subr.bf16.mxu1 %v2379_v39  ;;  %v2331_v19 = vpack.c.bf16 %v1028_v5, %v1021_v4  ;;  %v1049_v38 = vld [vmem:[%s4095_s8 + $0x3a8] sm:$0xff]  ;;  %v1056_v39 = vld [vmem:[%s4095_s8 + $0x3e0] sm:$0xff]  ;;  %v1512_v5 = vld [vmem:[%s4097_s10 + $0xb0] sm:$0xff] }
 0x311   : > { %v1495_v4 = vld [vmem:[%s4097_s10 + $0x28] sm:$0xff]  ;;  %v2415_v2 = vpack.c.bf16 %v1513_v6, %v1512_v5  ;;  %v1111_v27 = vld [vmem:[%s4095_s8 + $0x598] sm:$0xff] }
 0x312   : > { %2318 = vmatpush1.bf16.msra.mxu0 %v2317_v43  ;;  %2382 = vmatpush3.bf16.msra.mxu1 %v2381_v34  ;;  %v2401_v43 = vpack.c.bf16 %v1043_v37, %v1036_v36  ;;  %v2339_v34 = vpack.c.bf16 %v1056_v39, %v1049_v38  ;;  %v1119_v24 = vld [vmem:[%s4095_s8 + $0x5d8] sm:$0xff]  ;;  %v2419_v36 = vpack.c.bf16 %v1515_v26, %v1514_v25  ;;  %v1498_v37 = vld [vmem:[%s4097_s10 + $0x40] sm:$0xff]  ;;  %v1499_v38 = vld [vmem:[%s4097_s10 + $0x48] sm:$0xff] }
 0x313   : > { %2320 = vmatprep.subr.bf16.mxu0 %v2319_v16  ;;  %2384 = vmatprep.subr.bf16.mxu1 %v2383_v44  ;;  %v1063_v16 = vld [vmem:[%s4095_s8 + $0x418] sm:$0xff]  ;;  %v2403_v44 = vpack.c.bf16 %v1507_v41, %v1506_v40  ;;  %v1516_v39 = vld [vmem:[%s4097_s10 + $0xd0] sm:$0xff]  ;;  %v2421_v15 = vpack.c.bf16 %v1499_v38, %v1498_v37 }
 0x314   : > { %v1517_v40 = vld [vmem:[%s4097_s10 + $0xd8] sm:$0xff]  ;;  %v1528_v25 = vld [vmem:[%s4097_s10 + $0x130] sm:$0xff] }
 0x315   : > { %v1529_v26 = vld [vmem:[%s4097_s10 + $0x138] sm:$0xff]  ;;  %v1532_v38 = vld [vmem:[%s4097_s10 + $0x150] sm:$0xff] }
 0x316   : > { %2322 = vmatpush1.bf16.msra.mxu0 %v2321_v0  ;;  %2386 = vmatpush3.bf16.msra.mxu1 %v2385_v63  ;;  %v2343_v0 = vpack.c.bf16 %v1070_v45, %v1063_v16  ;;  %v1062_v63 = vld [vmem:[%s4095_s8 + $0x410] sm:$0xff]  ;;  %v1140_v16 = vld [vmem:[%s4095_s8 + $0x680] sm:$0xff] }
 0x317   : > { %2324 = vmatprep.subr.bf16.mxu0 %v2323_v51  ;;  %2388 = vmatprep.subr.bf16.mxu1 %v2387_v52  ;;  %v2405_v51 = vpack.c.bf16 %v1491_v47, %v1490_v46  ;;  %v1084_v52 = vld [vmem:[%s4095_s8 + $0x4c0] sm:$0xff]  ;;  %v2345_v59 = vpack.c.bf16 %v1069_v49, %v1062_v63  ;;  %v1500_v45 = vld [vmem:[%s4097_s10 + $0x50] sm:$0xff]  ;;  %v1501_v46 = vld [vmem:[%s4097_s10 + $0x58] sm:$0xff] }
 0x318   : > { %v1518_v47 = vld [vmem:[%s4097_s10 + $0xe0] sm:$0xff]  ;;  %v1139_v63 = vld [vmem:[%s4095_s8 + $0x678] sm:$0xff] }
 0x319   : > { %v1147_v49 = vld [vmem:[%s4095_s8 + $0x6b8] sm:$0xff] }
 0x31a   : > { %2326 = vmatpush1.bf16.msra.mxu0 %v2325_v62  ;;  %2390 = vmatpush3.bf16.msra.mxu1 %v2389_v13  ;;  %v2347_v62 = vpack.c.bf16 %v1084_v52, %v1077_v50  ;;  %v1076_v13 = vld [vmem:[%s4095_s8 + $0x480] sm:$0xff]  ;;  %v2425_v50 = vpack.c.bf16 %v1501_v46, %v1500_v45  ;;  %v2427_v52 = vpack.c.bf16 %v1519_v53, %v1518_v47  ;;  %v1552_v45 = vld [vmem:[%s4097_s10 + $0x1f0] sm:$0xff]  ;;  %v1553_v46 = vld [vmem:[%s4097_s10 + $0x1f8] sm:$0xff] }
 0x31b   : > { %2328 = vmatprep.subr.bf16.mxu0 %v2327_v8  ;;  %2392 = vmatprep.subr.bf16.mxu1 %v2391_v33  ;;  %v2409_v8 = vpack.c.bf16 %v1493_v57, %v1492_v56  ;;  %v1098_v33 = vld [vmem:[%s4095_s8 + $0x530] sm:$0xff]  ;;  %v2349_v9 = vpack.c.bf16 %v1083_v60, %v1076_v13  ;;  %v1503_v56 = vld [vmem:[%s4097_s10 + $0x68] sm:$0xff]  ;;  %v1538_v13 = vld [vmem:[%s4097_s10 + $0x180] sm:$0xff] }
 0x31c   : > { %v1539_v60 = vld [vmem:[%s4097_s10 + $0x188] sm:$0xff]  ;;  %v1504_v47 = vld [vmem:[%s4097_s10 + $0x70] sm:$0xff]  ;;  %v1505_v53 = vld [vmem:[%s4097_s10 + $0x78] sm:$0xff] }
 0x31e   : > { %2330 = vmatpush1.bf16.msra.mxu0 %v2329_v32  ;;  %2394 = vmatpush3.bf16.msra.mxu1 %v2393_v12  ;;  %v2351_v32 = vpack.c.bf16 %v1098_v33, %v1091_v61  ;;  %v1090_v12 = vld [vmem:[%s4095_s8 + $0x4f0] sm:$0xff]  ;;  %v1522_v33 = vld [vmem:[%s4097_s10 + $0x100] sm:$0xff] }
 0x31f   : > { %2332 = vmatprep.subr.bf16.mxu0 %v2331_v19  ;;  %2396 = vmatprep.subr.bf16.mxu1 %v2395_v20  ;;  %v2413_v19 = vpack.c.bf16 %v1495_v4, %v1494_v3  ;;  %v1112_v20 = vld [vmem:[%s4095_s8 + $0x5a0] sm:$0xff]  ;;  %v2353_v29 = vpack.c.bf16 %v1097_v17, %v1090_v12  ;;  %v1540_v3 = vld [vmem:[%s4097_s10 + $0x190] sm:$0xff]  ;;  %v1541_v4 = vld [vmem:[%s4097_s10 + $0x198] sm:$0xff] }
 0x320   : > { %v2439_v6 = vpack.c.bf16 %v1541_v4, %v1540_v3  ;;  %v1542_v12 = vld [vmem:[%s4097_s10 + $0x1a0] sm:$0xff]  ;;  %v1543_v17 = vld [vmem:[%s4097_s10 + $0x1a8] sm:$0xff]  ;;  %v1573_v3 = vld [vmem:[%s4097_s10 + $0x298] sm:$0xff] }
 0x322   : > { %2334 = vmatpush1.bf16.msra.mxu0 %v2333_v30  ;;  %2398 = vmatpush3.bf16.msra.mxu1 %v2397_v23  ;;  %v2355_v30 = vpack.c.bf16 %v1112_v20, %v1105_v18  ;;  %v1104_v23 = vld [vmem:[%s4095_s8 + $0x560] sm:$0xff] }
 0x323   : > { %2336 = vmatprep.subr.bf16.mxu0 %v2335_v28  ;;  %2400 = vmatprep.subr.bf16.mxu1 %v2399_v31  ;;  %v2417_v28 = vpack.c.bf16 %v1497_v22, %v1496_v21  ;;  %v1126_v31 = vld [vmem:[%s4095_s8 + $0x610] sm:$0xff]  ;;  %v2357_v41 = vpack.c.bf16 %v1111_v27, %v1104_v23  ;;  %v1526_v20 = vld [vmem:[%s4097_s10 + $0x120] sm:$0xff] }
 0x324   : > { %v1544_v21 = vld [vmem:[%s4097_s10 + $0x1b0] sm:$0xff]  ;;  %v1530_v27 = vld [vmem:[%s4097_s10 + $0x140] sm:$0xff] }
 0x326   : > { %2338 = vmatpush1.bf16.msra.mxu0 %v2337_v42  ;;  %2402 = vmatpush3.bf16.msra.mxu1 %v2401_v43  ;;  %v2359_v42 = vpack.c.bf16 %v1126_v31, %v1119_v24  ;;  %v1118_v43 = vld [vmem:[%s4095_s8 + $0x5d0] sm:$0xff]  ;;  %v1531_v24 = vld [vmem:[%s4097_s10 + $0x148] sm:$0xff]  ;;  %v1549_v31 = vld [vmem:[%s4097_s10 + $0x1d8] sm:$0xff] }
 0x327   : > { %2340 = vmatprep.subr.bf16.mxu0 %v2339_v34  ;;  %2404 = vmatprep.subr.bf16.mxu1 %v2403_v44  ;;  %v1125_v34 = vld [vmem:[%s4095_s8 + $0x608] sm:$0xff]  ;;  %v2423_v44 = vpack.c.bf16 %v1517_v40, %v1516_v39  ;;  %v1533_v39 = vld [vmem:[%s4097_s10 + $0x158] sm:$0xff]  ;;  %v1550_v40 = vld [vmem:[%s4097_s10 + $0x1e0] sm:$0xff] }
 0x328   : > { %v2361_v54 = vpack.c.bf16 %v1125_v34, %v1118_v43  ;;  %v1534_v43 = vld [vmem:[%s4097_s10 + $0x160] sm:$0xff] }
 0x329   : > { %1452 = vmatmul.mubr.f32.vlgmr.msra.gmra.mrb[8].mxu1 %v3434_v14 }
 0x32a   : > { %2342 = vmatpush1.bf16.msra.mxu0 %v2341_v48  ;;  %1456 = vmatprep.mubr.f32.mxu1 %v3459_v10  ;;  %v2363_v48 = vpack.c.bf16 %v1140_v16, %v1133_v35  ;;  %v1535_v35 = vld [vmem:[%s4097_s10 + $0x168] sm:$0xff]  ;;  %v1521_v16 = vld [vmem:[%s4097_s10 + $0xf8] sm:$0xff] }
 0x32b   : > { %2344 = vmatprep.subr.bf16.mxu0 %v2343_v0  ;;  %2406 = vmatpush3.bf16.msra.mxu1 %v2405_v51  ;;  %v1132_v0 = vld [vmem:[%s4095_s8 + $0x640] sm:$0xff]  ;;  %v1154_v51 = vld [vmem:[%s4095_s8 + $0x6f0] sm:$0xff] }
 0x32c   : > { %2408 = vmatprep.subr.bf16.mxu1 %v2407_v55  ;;  %v1502_v55 = vld [vmem:[%s4097_s10 + $0x60] sm:$0xff]  ;;  %v2365_v57 = vpack.c.bf16 %v1139_v63, %v1132_v0  ;;  %v2367_v58 = vpack.c.bf16 %v1154_v51, %v1147_v49  ;;  %v2463_v0 = vpack.c.bf16 %v1553_v46, %v1552_v45  ;;  %v1536_v63 = vld [vmem:[%s4097_s10 + $0x170] sm:$0xff]  ;;  %v1537_v49 = vld [vmem:[%s4097_s10 + $0x178] sm:$0xff] }
 0x32d   : > { %1457 = vmatmul.mubr.f32.gmra.mrb[10].mxu1 %v3467_v11  ;;  %v1570_v51 = vld [vmem:[%s4097_s10 + $0x280] sm:$0xff]  ;;  %v1563_v46 = vld [vmem:[%s4097_s10 + $0x248] sm:$0xff] }
 0x32e   : > { %2346 = vmatpush1.bf16.msra.mxu0 %v2345_v59  ;;  %v1153_v59 = vld [vmem:[%s4095_s8 + $0x6e8] sm:$0xff]  ;;  %v1562_v45 = vld [vmem:[%s4097_s10 + $0x240] sm:$0xff] }
 0x32f   : > { %2348 = vmatprep.subr.bf16.mxu0 %v2347_v62  ;;  %2410 = vmatpush3.bf16.msra.mxu1 %v2409_v8  ;;  %v2429_v62 = vpack.c.bf16 %v1503_v56, %v1502_v55  ;;  %v2369_v61 = vpack.c.bf16 %v1153_v59, %v1146_v7  ;;  %v2435_v8 = vpack.c.bf16 %v1539_v60, %v1538_v13  ;;  %v1586_v56 = vld [vmem:[%s4097_s10 + $0x300] sm:$0xff]  ;;  %v1463_v59 = vld [vmem:[%s4096_s9 + $0x8] sm:$0xff] }
 0x330   : > { %2412 = vmatprep.subr.bf16.mxu1 %v2411_v1  ;;  %v1523_v1 = vld [vmem:[%s4097_s10 + $0x108] sm:$0xff]  ;;  %v1462_v7 = vld [vmem:[%s4096_s9] sm:$0xff] }
 0x331   : > { %v2437_v5 = vpack.c.bf16 %v1523_v1, %v1522_v33  ;;  %v1554_v13 = vld [vmem:[%s4097_s10 + $0x200] sm:$0xff]  ;;  %v1555_v60 = vld [vmem:[%s4097_s10 + $0x208] sm:$0xff]  ;;  %v1464_v33 = vld [vmem:[%s4096_s9 + $0x10] sm:$0xff] }
 0x332   : > { %2350 = vmatpush1.bf16.msra.mxu0 %v2349_v9  ;;  %v1524_v9 = vld [vmem:[%s4097_s10 + $0x110] sm:$0xff] }
 0x333   : > { %2352 = vmatprep.subr.bf16.mxu0 %v2351_v32  ;;  %2414 = vmatpush3.bf16.msra.mxu1 %v2413_v19  ;;  %v1525_v32 = vld [vmem:[%s4097_s10 + $0x118] sm:$0xff]  ;;  %v2443_v19 = vpack.c.bf16 %v1543_v17, %v1542_v12  ;;  %v1572_v1 = vld [vmem:[%s4097_s10 + $0x290] sm:$0xff]  ;;  %v1470_v12 = vld [vmem:[%s4096_s9 + $0x40] sm:$0xff]  ;;  %v2469_v17 = vpack.c.bf16 %v1555_v60, %v1554_v13 }
 0x334   : > { %2416 = vmatprep.subr.bf16.mxu1 %v2415_v2  ;;  %v2441_v18 = vpack.c.bf16 %v1525_v32, %v1524_v9  ;;  %v1527_v2 = vld [vmem:[%s4097_s10 + $0x128] sm:$0xff]  ;;  %v1469_v32 = vld [vmem:[%s4096_s9 + $0x38] sm:$0xff] }
 0x335   : > { %v1569_v13 = vld [vmem:[%s4097_s10 + $0x278] sm:$0xff] }
 0x336   : > { %2354 = vmatpush1.bf16.msra.mxu0 %v2353_v29  ;;  %v1546_v29 = vld [vmem:[%s4097_s10 + $0x1c0] sm:$0xff] }
 0x337   : > { %2356 = vmatprep.subr.bf16.mxu0 %v2355_v30  ;;  %2418 = vmatpush3.bf16.msra.mxu1 %v2417_v28  ;;  %v2449_v30 = vpack.c.bf16 %v1529_v26, %v1528_v25  ;;  %v1548_v28 = vld [vmem:[%s4097_s10 + $0x1d0] sm:$0xff]  ;;  %v1471_v25 = vld [vmem:[%s4096_s9 + $0x48] sm:$0xff]  ;;  %v1574_v26 = vld [vmem:[%s4097_s10 + $0x2a0] sm:$0xff] }
 0x338   : > { %2420 = vmatprep.subr.bf16.mxu1 %v2419_v36  ;;  %v2453_v36 = vpack.c.bf16 %v1531_v24, %v1530_v27  ;;  %v2455_v37 = vpack.c.bf16 %v1549_v31, %v1548_v28 }
 0x33a   : > { %2358 = vmatpush1.bf16.msra.mxu0 %v2357_v41  ;;  %v1551_v41 = vld [vmem:[%s4097_s10 + $0x1e8] sm:$0xff] }
 0x33b   : > { %2360 = vmatprep.subr.bf16.mxu0 %v2359_v42  ;;  %2422 = vmatpush3.bf16.msra.mxu1 %v2421_v15  ;;  %v2457_v42 = vpack.c.bf16 %v1533_v39, %v1532_v38  ;;  %v2459_v34 = vpack.c.bf16 %v1551_v41, %v1550_v40  ;;  %v1520_v15 = vld [vmem:[%s4097_s10 + $0xf0] sm:$0xff]  ;;  %v1559_v38 = vld [vmem:[%s4097_s10 + $0x228] sm:$0xff]  ;;  %v1577_v40 = vld [vmem:[%s4097_s10 + $0x2b8] sm:$0xff] }
 0x33c   : > { %2424 = vmatprep.subr.bf16.mxu1 %v2423_v44  ;;  %v2431_v44 = vpack.c.bf16 %v1521_v16, %v1520_v15  ;;  %v1576_v39 = vld [vmem:[%s4097_s10 + $0x2b0] sm:$0xff]  ;;  %v1579_v15 = vld [vmem:[%s4097_s10 + $0x2c8] sm:$0xff] }
 0x33e   : > { %2362 = vmatpush1.bf16.msra.mxu0 %v2361_v54  ;;  %v2461_v54 = vpack.c.bf16 %v1535_v35, %v1534_v43  ;;  %v1560_v43 = vld [vmem:[%s4097_s10 + $0x230] sm:$0xff]  ;;  %v1578_v35 = vld [vmem:[%s4097_s10 + $0x2c0] sm:$0xff] }
 0x33f   : > { %2364 = vmatprep.subr.bf16.mxu0 %v2363_v48  ;;  %2426 = vmatpush3.bf16.msra.mxu1 %v2425_v50  ;;  %v2433_v48 = vpack.c.bf16 %v1505_v53, %v1504_v47  ;;  %v2465_v50 = vpack.c.bf16 %v1537_v49, %v1536_v63  ;;  %v1580_v47 = vld [vmem:[%s4097_s10 + $0x2d0] sm:$0xff]  ;;  %v1581_v53 = vld [vmem:[%s4097_s10 + $0x2d8] sm:$0xff]  ;;  %v1582_v49 = vld [vmem:[%s4097_s10 + $0x2e0] sm:$0xff] }
 0x340   : > { %2428 = vmatprep.subr.bf16.mxu1 %v2427_v52  ;;  %v1571_v52 = vld [vmem:[%s4097_s10 + $0x288] sm:$0xff]  ;;  %v1565_v63 = vld [vmem:[%s4097_s10 + $0x258] sm:$0xff] }
 0x341   : > { %v2467_v55 = vpack.c.bf16 %v1571_v52, %v1570_v51 }
 0x342   : > { %2366 = vmatpush1.bf16.msra.mxu0 %v2365_v57  ;;  %v1587_v57 = vld [vmem:[%s4097_s10 + $0x308] sm:$0xff] }
 0x343   : > { %2368 = vmatprep.subr.bf16.mxu0 %v2367_v58  ;;  %2430 = vmatpush3.bf16.msra.mxu1 %v2429_v62  ;;  %v2499_v58 = vpack.c.bf16 %v1587_v57, %v1586_v56  ;;  %v1465_v62 = vld [vmem:[%s4096_s9 + $0x18] sm:$0xff]  ;;  %v1567_v56 = vld [vmem:[%s4097_s10 + $0x268] sm:$0xff]  ;;  %v1584_v57 = vld [vmem:[%s4097_s10 + $0x2f0] sm:$0xff] }
 0x344   : > { %2432 = vmatprep.subr.bf16.mxu1 %v2431_v44  ;;  %v2483_v44 = vpack.c.bf16 %v1579_v15, %v1578_v35 }
 0x346   : > { %2370 = vmatpush1.bf16.msra.mxu0 %v2369_v61 }
 0x347   : > { %2436 = vmatprep.subr.bf16.mxu0 %v2435_v8  ;;  %2434 = vmatpush3.bf16.msra.mxu1 %v2433_v48  ;;  %v2487_v48 = vpack.c.bf16 %v1581_v53, %v1580_v47 }
 0x348   : > { %2468 = vmatprep.subr.bf16.mxu1 %v2467_v55  ;;  %v1566_v55 = vld [vmem:[%s4097_s10 + $0x260] sm:$0xff] }
 0x349   : > { %1375 = vmatmul.mubr.f32.vlgmr.msra.gmra.mrb[6].mxu0 %v3434_v14  ;;  %v1545_v14 = vld [vmem:[%s4097_s10 + $0x1b8] sm:$0xff] }
 0x34a   : > { %1380 = vmatprep.mubr.f32.mxu0 %v3459_v10  ;;  %2438 = vmatpush3.bf16.msra.mxu0 %v2437_v5  ;;  %v2445_v10 = vpack.c.bf16 %v1527_v2, %v1526_v20  ;;  %v2447_v22 = vpack.c.bf16 %v1545_v14, %v1544_v21  ;;  %v1472_v20 = vld [vmem:[%s4096_s9 + $0x50] sm:$0xff]  ;;  %v2471_v2 = vpack.c.bf16 %v1573_v3, %v1572_v1  ;;  %v1557_v14 = vld [vmem:[%s4097_s10 + $0x218] sm:$0xff] }
 0x34b   : > { %2440 = vmatprep.subr.bf16.mxu0 %v2439_v6  ;;  %v1556_v21 = vld [vmem:[%s4097_s10 + $0x210] sm:$0xff] }
 0x34c   : > { %v2473_v24 = vpack.c.bf16 %v1557_v14, %v1556_v21  ;;  %v1474_v21 = vld [vmem:[%s4096_s9 + $0x60] sm:$0xff] }
 0x34d   : > { %1381 = vmatmul.mubr.f32.gmra.mrb[8].mxu0 %v3467_v11  ;;  %v1547_v11 = vld [vmem:[%s4097_s10 + $0x1c8] sm:$0xff] }
 0x34e   : > { %2442 = vmatpush3.bf16.msra.mxu0 %v2441_v18  ;;  %v2451_v23 = vpack.c.bf16 %v1547_v11, %v1546_v29  ;;  %v1575_v29 = vld [vmem:[%s4097_s10 + $0x2a8] sm:$0xff] }
 0x34f   : > { %2444 = vmatprep.subr.bf16.mxu0 %v2443_v19 }
 0x352   : > { %2446 = vmatpush3.bf16.msra.mxu0 %v2445_v10 }
 0x353   : > { %2448 = vmatprep.subr.bf16.mxu0 %v2447_v22 }
 0x356   : > { %2450 = vmatpush3.bf16.msra.mxu0 %v2449_v30 }
 0x357   : > { %2452 = vmatprep.subr.bf16.mxu0 %v2451_v23 }
 0x35a   : > { %2454 = vmatpush3.bf16.msra.mxu0 %v2453_v36  ;;  %v2475_v36 = vpack.c.bf16 %v1575_v29, %v1574_v26 }
 0x35b   : > { %2456 = vmatprep.subr.bf16.mxu0 %v2455_v37  ;;  %v1558_v37 = vld [vmem:[%s4097_s10 + $0x220] sm:$0xff] }
 0x35c   : > { %v2477_v41 = vpack.c.bf16 %v1559_v38, %v1558_v37 }
 0x35e   : > { %2458 = vmatpush3.bf16.msra.mxu0 %v2457_v42  ;;  %v2479_v42 = vpack.c.bf16 %v1577_v40, %v1576_v39 }
 0x35f   : > { %2460 = vmatprep.subr.bf16.mxu0 %v2459_v34  ;;  %v1561_v34 = vld [vmem:[%s4097_s10 + $0x238] sm:$0xff] }
 0x360   : > { %v2481_v16 = vpack.c.bf16 %v1561_v34, %v1560_v43 }
 0x362   : > { %2462 = vmatpush3.bf16.msra.mxu0 %v2461_v54  ;;  %v2485_v54 = vpack.c.bf16 %v1563_v46, %v1562_v45 }
 0x363   : > { %2464 = vmatprep.subr.bf16.mxu0 %v2463_v0  ;;  %v1564_v0 = vld [vmem:[%s4097_s10 + $0x250] sm:$0xff] }
 0x364   : > { %v2489_v51 = vpack.c.bf16 %v1565_v63, %v1564_v0 }
 0x366   : > { %2466 = vmatpush3.bf16.msra.mxu0 %v2465_v50  ;;  %v1583_v50 = vld [vmem:[%s4097_s10 + $0x2e8] sm:$0xff] }
 0x367   : > { %2500 = vmatprep.subr.bf16.mxu0 %v2499_v58  ;;  %v2491_v52 = vpack.c.bf16 %v1583_v50, %v1582_v49 }
 0x3dc   : > { %v1222_v61 = vpop.f32.mrb[2].mxu0  ;;  %v1299_v8 = vpop.f32.mrb[4].mxu1 }
 0x3dd   : > { %v1224_v4 = vpop.f32.mrb[3].mxu0  ;;  %v1301_v5 = vpop.f32.mrb[5].mxu1  ;;  %v1476_v18 = vmul.f32 %v1462_v7, %v1222_v61  ;;  %v1478_v19 = vmul.f32 %v1464_v33, %v1299_v8  ;;  %v2493_v7 = vpack.c.bf16 %v1567_v56, %v1566_v55  ;;  %v1468_v33 = vld [vmem:[%s4096_s9 + $0x30] sm:$0xff] }
 0x3de   : > { %v1477_v6 = vmul.f32 %v1463_v59, %v1224_v4  ;;  %v1479_v9 = vmul.f32 %v1465_v62, %v1301_v5  ;;  %v1568_v62 = vld [vmem:[%s4097_s10 + $0x270] sm:$0xff] }
 0x3df   : > { %v2497_v60 = vpack.c.bf16 %v1569_v13, %v1568_v62 }
 0x3e0   : > { %v1228_v10 = vpop.f32.mrb[4].mxu0  ;;  %v1305_v22 = vpop.f32.mrb[6].mxu1  ;;  %1659 = vmatprep.mubr.f32.mxu1 %v1477_v6  ;;  %1734 = vmatprep.mubr.f32.mxu0 %v1479_v9  ;;  %v1475_v6 = vld [vmem:[%s4096_s9 + $0x68] sm:$0xff] }
 0x3e1   : > { %v1230_v11 = vpop.f32.mrb[5].mxu0  ;;  %v1307_v30 = vpop.f32.mrb[7].mxu1  ;;  %1660 = vmatmul.mubr.f32.vlgmr.msra.gmra.mrb[12].mxu1 %v1476_v18  ;;  %1735 = vmatmul.mubr.f32.vlgmr.msra.gmra.mrb[10].mxu0 %v1478_v19  ;;  %v1483_v28 = vmul.f32 %v1469_v32, %v1228_v10  ;;  %v1485_v31 = vmul.f32 %v1471_v25, %v1305_v22  ;;  %v1466_v18 = vld [vmem:[%s4096_s9 + $0x20] sm:$0xff]  ;;  %v1473_v10 = vld [vmem:[%s4096_s9 + $0x58] sm:$0xff] }
 0x3e2   : > { %v1484_v23 = vmul.f32 %v1470_v12, %v1230_v11  ;;  %v1486_v27 = vmul.f32 %v1472_v20, %v1307_v30  ;;  %2470 = vmatpush3.bf16.msra.mxu1 %v2469_v17  ;;  %2502 = vmatpush3.bf16.msra.mxu0 %v2499_v58  ;;  %v1585_v58 = vld [vmem:[%s4097_s10 + $0x2f8] sm:$0xff]  ;;  %v1467_v12 = vld [vmem:[%s4096_s9 + $0x28] sm:$0xff] }
 0x3e3   : > { %2472 = vmatprep.subr.bf16.mxu1 %v2471_v2  ;;  %v2495_v59 = vpack.c.bf16 %v1585_v58, %v1584_v57 }
 0x3e4   : > { %1664 = vmatprep.mubr.f32.mxu1 %v1484_v23  ;;  %1739 = vmatprep.mubr.f32.mxu0 %v1486_v27 }
 0x3e5   : > { %1665 = vmatmul.mubr.f32.gmra.mrb[14].mxu1 %v1483_v28  ;;  %1740 = vmatmul.mubr.f32.gmra.mrb[12].mxu0 %v1485_v31 }
 0x3e6   : > { %2474 = vmatpush3.bf16.msra.mxu1 %v2473_v24 }
 0x3e7   : > { %2476 = vmatprep.subr.bf16.mxu1 %v2475_v36 }
 0x3ea   : > { %2478 = vmatpush3.bf16.msra.mxu1 %v2477_v41 }
 0x3eb   : > { %2480 = vmatprep.subr.bf16.mxu1 %v2479_v42 }
 0x3ee   : > { %2482 = vmatpush3.bf16.msra.mxu1 %v2481_v16 }
 0x3ef   : > { %2484 = vmatprep.subr.bf16.mxu1 %v2483_v44 }
 0x3f2   : > { %2486 = vmatpush3.bf16.msra.mxu1 %v2485_v54 }
 0x3f3   : > { %2488 = vmatprep.subr.bf16.mxu1 %v2487_v48 }
 0x3f6   : > { %2490 = vmatpush3.bf16.msra.mxu1 %v2489_v51 }
 0x3f7   : > { %2492 = vmatprep.subr.bf16.mxu1 %v2491_v52  ;;  %v1902_v52 = vld [vmem:[%s4098_s11] sm:$0x1] }
 0x3fa   : > { %2494 = vmatpush3.bf16.msra.mxu1 %v2493_v7 }
 0x3fb   : > { %2496 = vmatprep.subr.bf16.mxu1 %v2495_v59 }
 0x3fc   : > { %v2024_v61 = vpop.f32.mrb[8].mxu1 }
 0x3fd   : > { %v2025_v8 = vpop.f32.mrb[9].mxu1 }
 0x3fe   : > { %v2026_v1 = vadd.f32 %v2025_v8, %v2024_v61  ;;  %2498 = vmatpush3.bf16.msra.mxu1 %v2497_v60 }
 0x400   : > { %v1482_v3 = vmul.f32 %v2026_v1, %v1468_v33  ;;  %v2027_v4 = vpop.f32.mrb[10].mxu1 }
 0x401   : > { %v2028_v5 = vpop.f32.mrb[11].mxu1 }
 0x402   : > { %v2029_v9 = vadd.f32 %v2028_v5, %v2027_v4  ;;  %2152 = vmatprep.mubr.msk.f32.mxu0 %vm1588_vm11, %v1482_v3 }
 0x404   : > { %v1489_v32 = vmul.f32 %v2029_v9, %v1475_v6 }
 0x406   : > { %2153 = vmatmul.mubr.msk.f32.vlgmr.msra.gmra.mrb[14].mxu0 %vm1588_vm11, %v1489_v32 }
 0x41c   : > { %v1376_v17 = vpop.f32.mrb[6].mxu0 }
 0x41d   : > { %v1378_v19 = vpop.f32.mrb[7].mxu0  ;;  %v1480_v2 = vmul.f32 %v1466_v18, %v1376_v17 }
 0x41e   : > { %v1481_v20 = vmul.f32 %v1467_v12, %v1378_v19 }
 0x420   : > { %v1382_v14 = vpop.f32.mrb[8].mxu0  ;;  %1809 = vmatprep.mubr.f32.mxu1 %v1481_v20 }
 0x421   : > { %v1384_v22 = vpop.f32.mrb[9].mxu0  ;;  %1810 = vmatmul.mubr.f32.vlgmr.msra.gmra.mrb[16].mxu1 %v1480_v2  ;;  %v1487_v26 = vmul.f32 %v1473_v10, %v1382_v14 }
 0x422   : > { %v1488_v25 = vmul.f32 %v1474_v21, %v1384_v22 }
 0x424   : > { %1814 = vmatprep.mubr.f32.mxu1 %v1488_v25 }
 0x425   : > { %1815 = vmatmul.mubr.f32.gmra.mrb[18].mxu1 %v1487_v26 }
 0x4b4   : > { %v2062_v29 = vpop.f32.mrb[12].mxu1  ;;  %v2100_v11 = vpop.f32.mrb[10].mxu0 }
 0x4b5   : > { %v2063_v30 = vpop.f32.mrb[13].mxu1  ;;  %v2101_v23 = vpop.f32.mrb[11].mxu0 }
 0x4b6   : > { %v2064_v27 = vadd.f32 %v2063_v30, %v2062_v29  ;;  %v2102_v24 = vadd.f32 %v2101_v23, %v2100_v11 }
 0x4b8   : > { %v1737_v28 = vadd.f32 %v2102_v24, %v2064_v27  ;;  %v2065_v31 = vpop.f32.mrb[14].mxu1  ;;  %v2103_v36 = vpop.f32.mrb[12].mxu0 }
 0x4b9   : > { %v2066_v37 = vpop.f32.mrb[15].mxu1  ;;  %v2104_v38 = vpop.f32.mrb[13].mxu0 }
 0x4ba   : > { %v2067_v39 = vadd.f32 %v2066_v37, %v2065_v31  ;;  %v2105_v40 = vadd.f32 %v2104_v38, %v2103_v36 }
 0x4bc   : > { %v1742_v41 = vadd.f32 %v2105_v40, %v2067_v39 }
 0x4d9   : > { %v2154_v42 = vpop.f32.mrb[14].mxu0 }
 0x4da   : > { %v1886_v43 = vpop.f32.mrb[15].mxu0 }
 0x4f4   : > { %v2138_v34 = vpop.f32.mrb[16].mxu1 }
 0x4f5   : > { %v2139_v35 = vpop.f32.mrb[17].mxu1 }
 0x4f6   : > { %v2140_v15 = vadd.f32 %v2139_v35, %v2138_v34 }
 0x4f8   : > { %v1812_v16 = vadd.f32 %v2140_v15, %v1737_v28  ;;  %v2141_v44 = vpop.f32.mrb[18].mxu1 }
 0x4f9   : > { %v2142_v45 = vpop.f32.mrb[19].mxu1 }
 0x4fa   : > { %v1887_v46 = vadd.f32 %v1886_v43, %v1812_v16  ;;  %v2143_v47 = vadd.f32 %v2142_v45, %v2141_v44 }
 0x4fc   : > { %v1817_v53 = vadd.f32 %v2143_v47, %v1742_v41 }
 0x4fe   : > { %v1892_v54 = vadd.f32 %v2154_v42, %v1817_v53 }
 0x500   : > { %v1895_v48 = vadd.f32 %v1892_v54, %v1887_v46 }
 0x502   : > { %v1896_v0 = vrot.slane %v1895_v48, 4 }
 0x504   : > { %v1897_v63 = vadd.f32 %v1896_v0, %v1895_v48 }
 0x506   : > { %v1898_v49 = vrot.slane %v1897_v63, 2 }
 0x508   : > { %v1899_v50 = vadd.f32 %v1898_v49, %v1897_v63 }
 0x50a   : > { %v1900_v51 = vrot.slane %v1899_v50, 1 }
 0x50c   : > { %v1901_v55 = vadd.f32 %v1900_v51, %v1899_v50 }
 0x50e   : > { %v1903_v56 = vadd.f32 %v1902_v52, %v1901_v55 }
 0x510   : > { %1904 = vst [vmem:[%s405_s19] sm:$0x1] %v1903_v56 }
 0x511   : > { %2568 = shalt.err (!%p2565_p3)
}
 0x512   : > { %s2569_s0 = scalar_lea.hbm %s4045_s16, 16  ;;  %s2573_s19 = scalar_lea.hbm %s4099_s12, 32 }
 0x513   : > { %p2570_p4 = scmp.ne.s32.totalorder %s4045_s16, %s2569_s0  ;;  %p2574_p9 = scmp.lt.u32.totalorder %s4045_s16, %s4099_s12 }
 0x514   : > { %p2575_p10 = scmp.lt.u32.totalorder %s2573_s19, %s2569_s0  ;;  %p2577_p12 = scmp.lt.u32.totalorder %s2569_s0, %s4045_s16 }
 0x515   : > { %p2571_p7 = pnand %p2570_p4, %p2733_p5 }
 0x516   : > { %p2576_p11 = por %p2575_p10, %p2574_p9 }
 0x517   : > { %p2572_p8 = pneg %p2571_p7 }
 0x518   : > { %p2578_p13 = por %p2577_p12, %p2576_p11 }
 0x51a   : > { %p2579_p0 = pnand %p2578_p13, %p2572_p8 }
 0x51c   : > { %2582 = shalt.err (!%p2579_p0)
}
 0x51d   : > { %2503 = dma.vmem_to_hbm [thread:$0]  (%p2733_p5), %s4047_s15, 16, %s4045_s16, %s1906_s17  }
 0x51e PF: > { %p2509_p1 = scmp.ge.s32.totalorder %s2617_s24, 2  ;;  %s1930_s28 = sand.u32 1, %s2605_s21  }
 0x51f   : > { %s1931_s25 = scalar_lea.sflag [#allocation5], %s1930_s28 }
 0x520   : > { %p2506_p2 = pnand %p2509_p1, %p2737_p6 }
 0x522   : > { %2600 = dma.done.wait (!%p2506_p2), %s1931_s25, 16  }
 0x523   : > { %2602 = vsyncadd (!%p2506_p2), %s1931_s25, 4294967280  ;;  %p22_p3 = scmp.ge.s32.totalorder %s2720_s27, 4   ;;  %s4123_s21 = smov %s2609_s22 }
 0x524   : > { %s4124_s22 = smov %s2613_s23  ;;  %s4125_s23 = smov %s2731_s30 }
 0x525   : > { %s4126_s24 = smov %s2720_s27  ;;  %24 = sbr.rel (!%p22_p3) target bundleno = 7 (0x7), region = 103 }
 0x52c   :  { %1935 = vsyncpa [#allocation5], 1 }
 0x52d   :  { %1937 = vsyncpa [#allocation5 + $0x1], 1 }

</bundles_post_ra>
